<compile_context>
chip_gen: v6e
topology: v6e:2x2x1
jax: 0.10.0
libtpu: 0.0.40
codegen_flags: <defaults>
</compile_context>

<pallas_src>
import math
import functools

import jax
import jax.numpy as jnp
from jax.experimental import pallas as pl
from jax.experimental.pallas import tpu as pltpu

_MiB = 1024 * 1024


def _chained_attn_kernel(q_ref, kv_ref, o_ref, acc_ref, *, scale):
    """One grid step = (bh block, layer). The layer axis is the serial chain.

    q_ref  : (BLK_BH, Lq, D)      external query (consumed at layer 0 only)
    kv_ref : (2, BLK_BH, Lkv, D)  merged K (index 0) / V (index 1) tile for this layer
    o_ref  : (BLK_BH, Lq, D)      output (written once, at the last layer)
    acc_ref: (BLK_BH, Lq, D)      f32 carried query chain (VMEM scratch)
    """
    layer = pl.program_id(1)

    # Seed the carried query with the external input at the first layer.
    @pl.when(layer == 0)
    def _():
        acc_ref[...] = q_ref[...].astype(jnp.float32)

    kv_dtype = kv_ref.dtype
    # MXU runs bf16 natively; f32 matmuls take a slow decomposed path. Keep f32
    # accumulation via preferred_element_type (standard flash-attention practice).
    compute_dtype = jnp.bfloat16 if kv_dtype == jnp.float32 else kv_dtype

    # Fold 1/sqrt(D) into Q (Lq*D elements) instead of scaling the Lq*Lkv scores.
    q = (acc_ref[...] * scale).astype(compute_dtype)     # (BLK_BH, Lq, D)
    k = kv_ref[0].astype(compute_dtype)                  # (BLK_BH, Lkv, D)
    v = kv_ref[1].astype(compute_dtype)                  # (BLK_BH, Lkv, D)

    # scores = Q K^T : contract last dims directly -> no explicit K transpose.
    s = jnp.einsum("bqd,bkd->bqk", q, k, preferred_element_type=jnp.float32)

    # Numerically stable softmax over the key axis; normalization deferred to the accumulator.
    m = jnp.max(s, axis=-1, keepdims=True)
    p = jnp.exp(s - m)                                   # values in (0, 1] -> bf16-cast safe
    l = jnp.sum(p, axis=-1, keepdims=True)
    # EUP approx reciprocal + one Newton step: near-free, full f32 accuracy (l >= 1).
    inv = pl.reciprocal(l, approx=True)
    inv = inv * (2.0 - l * inv)

    # Un-normalized PV matmul, then scale the (BLK_BH, Lq, D) f32 accumulator.
    pv = jnp.einsum("bqk,bkd->bqd", p.astype(compute_dtype), v,
                    preferred_element_type=jnp.float32)
    acc_ref[...] = pv * inv

    # Single cast + lane-dense store at the end of the chain.
    @pl.when(layer == pl.num_programs(1) - 1)
    def _():
        o_ref[...] = acc_ref[...].astype(o_ref.dtype)


def _tpu_vmem_and_cores():
    """Per-TensorCore VMEM capacity + TC count (heuristic: 64 MiB/TC parts = v7x, 2 TCs)."""
    try:
        vmem = int(pltpu.get_tpu_info().vmem_capacity_bytes)
    except Exception:
        vmem = 64 * _MiB  # conservative fallback
    num_tc = 2 if vmem <= 64 * _MiB else 1
    return vmem, num_tc


def _vmem_need_bytes(blk, Lq, Lkv, D, q_isz, kv_isz, kv_buffers):
    """Per-block VMEM footprint, including the intermediates the body materializes."""
    kv_tile = 2 * blk * Lkv * D * kv_isz                # merged K+V tile (one buffer)
    q_tile = blk * Lq * D * q_isz
    o_tile = blk * Lq * D * q_isz
    acc = blk * Lq * D * 4                              # f32 carried query scratch
    interm = 2 * blk * Lq * Lkv * 4                     # f32 scores + exp probs
    low_tmp = blk * Lq * D * 2 + blk * Lq * Lkv * 2     # bf16 matmul operands
    return kv_buffers * kv_tile + 2 * (q_tile + o_tile) + acc + interm + low_tmp


def _pick_block_bh(BH, Lq, Lkv, D, q_isz, kv_isz, budget, kv_buffers, num_tc):
    """Largest divisor of BH that fits the VMEM budget. On 2-TC chips prefer a block whose
    grid extent is a multiple of the TC count so the parallel bh axis splits evenly."""
    def fits(blk):
        return _vmem_need_bytes(blk, Lq, Lkv, D, q_isz, kv_isz, kv_buffers) <= budget

    fitting = [d for d in range(BH, 0, -1) if BH % d == 0 and fits(d)]
    if not fitting:
        # TODO(synk): add an Lkv-tile grid axis with online softmax (flash-style m/l carries)
        # for very long KV caches that cannot fit whole-Lkv blocks in VMEM.
        raise ValueError(
            "KV tile does not fit VMEM even at block_bh=1; an Lkv-tiled online-softmax "
            "path is required for this shape.")
    if num_tc > 1:
        for d in fitting:
            if (BH // d) % num_tc == 0:
                return d
    return fitting[0]


def simple_attn_pallas(inp, kvcaches, *, block_bh=None):
    """inp: (B, H, Lq, D); kvcaches: (L, 2, B, H, Lkv, D). Returns (B, H, Lq, D)."""
    B, H, Lq, D = inp.shape
    L, two, Bk, Hk, Lkv, Dk = kvcaches.shape
    assert two == 2 and Bk == B and Hk == H and Dk == D
    scale = 1.0 / math.sqrt(D)

    BH = B * H
    # Contiguity-preserving reshapes only -- no HBM copy of the KV cache.
    q = inp.reshape(BH, Lq, D)
    kv = kvcaches.reshape(L, 2, BH, Lkv, D)

    q_isz = jnp.dtype(inp.dtype).itemsize
    kv_isz = jnp.dtype(kvcaches.dtype).itemsize

    vmem_cap, num_tc = _tpu_vmem_and_cores()
    # 128 MiB parts (v5e/v6e): use most of the VMEM; 64 MiB parts (v7x): leave headroom.
    if vmem_cap >= 100 * _MiB:
        budget = 96 * _MiB
        kv_buffers = 3          # deeper K/V pipeline to hide DMA jitter on the serial chain
    else:
        budget = max(24 * _MiB, vmem_cap - 20 * _MiB)   # ~44 MiB on v7x
        kv_buffers = 2

    if block_bh is None:
        block_bh = _pick_block_bh(BH, Lq, Lkv, D, q_isz, kv_isz, budget, kv_buffers, num_tc)
    assert BH % block_bh == 0, "block_bh must divide B*H"

    need = _vmem_need_bytes(block_bh, Lq, Lkv, D, q_isz, kv_isz, kv_buffers)
    vmem_limit = int(min(budget, max(32 * _MiB, need + 4 * _MiB)))

    grid = (BH // block_bh, L)  # layer axis innermost: serial chain per bh block

    # Merged K+V: one (strided, 2-chunk) DMA per grid step, selected purely via the index_map.
    kv_shape = (None, 2, block_bh, Lkv, D)
    kv_index = lambda bh, l: (l, 0, bh, 0, 0)
    kv_spec = pl.BlockSpec(kv_shape, kv_index)
    if kv_buffers > 2:
        try:
            kv_spec = pl.BlockSpec(kv_shape, kv_index, pipeline_mode=pl.Buffered(kv_buffers))
        except TypeError:  # older Pallas without pipeline_mode: fall back to double-buffering
            kv_spec = pl.BlockSpec(kv_shape, kv_index)

    out = pl.pallas_call(
        functools.partial(_chained_attn_kernel, scale=scale),
        out_shape=jax.ShapeDtypeStruct((BH, Lq, D), inp.dtype),
        grid_spec=pltpu.PrefetchScalarGridSpec(
            num_scalar_prefetch=0,
            grid=grid,
            in_specs=[
                pl.BlockSpec((block_bh, Lq, D), lambda bh, l: (bh, 0, 0)),
                kv_spec,
            ],
            out_specs=pl.BlockSpec((block_bh, Lq, D), lambda bh, l: (bh, 0, 0)),
            scratch_shapes=[pltpu.VMEM((block_bh, Lq, D), jnp.float32)],
        ),
        compiler_params=pltpu.CompilerParams(
            dimension_semantics=("parallel", "arbitrary"),
            vmem_limit_bytes=vmem_limit,
        ),
    )(q, kv)

    return out.reshape(B, H, Lq, D)


def simple_attn_reference(inp, kvcaches):
    """Pure-JAX f32 reference of the torch loop (for correctness check)."""
    D = inp.shape[-1]
    scale = 1.0 / math.sqrt(D)
    x = inp.astype(jnp.float32)
    for idx in range(kvcaches.shape[0]):
        k = kvcaches[idx, 0].astype(jnp.float32)
        v = kvcaches[idx, 1].astype(jnp.float32)
        s = jnp.einsum("bhqd,bhkd->bhqk", x, k) * scale
        p = jax.nn.softmax(s, axis=-1)
        x = jnp.einsum("bhqk,bhkd->bhqd", p, v)
    return x.astype(inp.dtype)


if __name__ == "__main__":
    # Small, deterministic shapes consistent with the module's forward:
    # head_dim kept at 128 (module constant); fewer layers/heads for speed.
    layer_num = 4
    batch = 2
    heads = 8          # small stand-in for q_head_num / kv_head_num (MHA here)
    q_len = 8
    kv_len = 128
    head_dim = 128

    key = jax.random.PRNGKey(0)
    k_in, k_kv = jax.random.split(key)

    # Case 1: f32 input + f32 KV cache (in-kernel bf16 MXU operands, f32 accumulation).
    x32 = jax.random.normal(k_in, (batch, heads, q_len, head_dim), dtype=jnp.float32)
    kv32 = jax.random.normal(
        k_kv, (layer_num, 2, batch, heads, kv_len, head_dim), dtype=jnp.float32)
    out32 = jax.block_until_ready(simple_attn_pallas(x32, kv32))
    ref32 = simple_attn_reference(x32, kv32)
    assert jnp.allclose(out32, ref32, atol=2e-2, rtol=2e-2), "f32-cache mismatch vs reference"

    # Case 2: bf16-streamed KV cache + bf16 query (halves the dominant HBM traffic).
    x16 = x32.astype(jnp.bfloat16)
    kv16 = kv32.astype(jnp.bfloat16)
    out16 = jax.block_until_ready(simple_attn_pallas(x16, kv16))
    ref16 = simple_attn_reference(x16, kv16)
    assert jnp.allclose(out16.astype(jnp.float32), ref16.astype(jnp.float32),
                        atol=3e-2, rtol=3e-2), "bf16-cache mismatch vs reference"

    print("KERNEL_OK")
</pallas_src>

<mosaic_0001>
module attributes {stable_mosaic.version = 11 : i64} {
  func.func @_chained_attn_kernel(%arg0: i32, %arg1: i32, %arg2: memref<8x8x128xf32, #tpu.memory_space<vmem>>, %arg3: memref<1x2x8x128x128xf32, #tpu.memory_space<vmem>>, %arg4: memref<8x8x128xf32, #tpu.memory_space<vmem>>, %arg5: memref<8x8x128xf32, #tpu.memory_space<vmem>>) attributes {dimension_semantics = [#tpu.dimension_semantics<parallel>, #tpu.dimension_semantics<arbitrary>], iteration_bounds = array<i64: 2, 4>, scalar_prefetch = 0 : i64, scratch_operands = 1 : i64, tpu.core_type = #tpu.core_type<tc>, window_params = [{transform_indices = @transform_0, window_bounds = array<i64: 8, 8, 128>}, {transform_indices = @transform_1, window_bounds = array<i64: 1, 2, 8, 128, 128>}, {transform_indices = @transform_2, window_bounds = array<i64: 8, 8, 128>}]} {
    %c0_i32 = arith.constant 0 : i32
    %0 = arith.cmpi eq, %arg1, %c0_i32 : i32
    %1 = arith.extui %0 : i1 to i32
    %c0_i32_0 = arith.constant 0 : i32
    %2 = arith.cmpi ne, %1, %c0_i32_0 : i32
    scf.if %2 {
      %c0_21 = arith.constant 0 : index
      %c0_22 = arith.constant 0 : index
      %c0_23 = arith.constant 0 : index
      %34 = vector.load %arg2[%c0_21, %c0_22, %c0_23] : memref<8x8x128xf32, #tpu.memory_space<vmem>>, vector<8x8x128xf32>
      %c0_24 = arith.constant 0 : index
      %c0_25 = arith.constant 0 : index
      %c0_26 = arith.constant 0 : index
      %35 = vector.load %arg5[%c0_24, %c0_25, %c0_26] : memref<8x8x128xf32, #tpu.memory_space<vmem>>, vector<8x8x128xf32>
      tpu.vector_store %arg5[%c0_24, %c0_25, %c0_26], %34 {strides = array<i32>} : memref<8x8x128xf32, #tpu.memory_space<vmem>>, vector<8x8x128xf32>,
    } else {
    }
    %c0 = arith.constant 0 : index
    %c0_1 = arith.constant 0 : index
    %c0_2 = arith.constant 0 : index
    %3 = vector.load %arg5[%c0, %c0_1, %c0_2] : memref<8x8x128xf32, #tpu.memory_space<vmem>>, vector<8x8x128xf32>
    %cst = arith.constant 0.0883883461 : f32
    %4 = vector.broadcast %cst : f32 to vector<8x8x128xf32>
    %5 = arith.mulf %3, %4 : vector<8x8x128xf32>
    %6 = arith.truncf %5 : vector<8x8x128xf32> to vector<8x8x128xbf16>
    %c0_3 = arith.constant 0 : index
    %c0_4 = arith.constant 0 : index
    %c0_5 = arith.constant 0 : index
    %c0_6 = arith.constant 0 : index
    %c0_7 = arith.constant 0 : index
    %7 = vector.load %arg3[%c0_3, %c0_4, %c0_5, %c0_6, %c0_7] : memref<1x2x8x128x128xf32, #tpu.memory_space<vmem>>, vector<1x1x8x128x128xf32>
    %8 = vector.shape_cast %7 : vector<1x1x8x128x128xf32> to vector<8x128x128xf32>
    %9 = arith.truncf %8 : vector<8x128x128xf32> to vector<8x128x128xbf16>
    %c0_8 = arith.constant 0 : index
    %c1 = arith.constant 1 : index
    %c0_9 = arith.constant 0 : index
    %c0_10 = arith.constant 0 : index
    %c0_11 = arith.constant 0 : index
    %10 = vector.load %arg3[%c0_8, %c1, %c0_9, %c0_10, %c0_11] : memref<1x2x8x128x128xf32, #tpu.memory_space<vmem>>, vector<1x1x8x128x128xf32>
    %11 = vector.shape_cast %10 : vector<1x1x8x128x128xf32> to vector<8x128x128xf32>
    %12 = arith.truncf %11 : vector<8x128x128xf32> to vector<8x128x128xbf16>
    "tpu.trace_start"() <{level = 10 : i32, message = "bqd,bkd->bqk"}> : () -> ()
    %cst_12 = arith.constant dense<0.000000e+00> : vector<8x8x128xf32>
    %13 = tpu.matmul %6, %9, %cst_12 {dimension_numbers = #tpu.dot_dimension_numbers<[2], [2], [1], [1], [0, 0, 0, 1, 1, 1], [0], [0]>} : vector<8x8x128xbf16>, vector<8x128x128xbf16>, vector<8x8x128xf32> -> vector<8x8x128xf32>
    "tpu.trace_stop"() : () -> ()
    %cst_13 = arith.constant dense<0xFF800000> : vector<8x8xf32>
    %14 = vector.multi_reduction <maximumf>, %13, %cst_13 [2] : vector<8x8x128xf32> to vector<8x8xf32>
    %15 = vector.shape_cast %14 : vector<8x8xf32> to vector<8x8x1xf32>
    %16 = vector.broadcast %15 : vector<8x8x1xf32> to vector<8x8x128xf32>
    %17 = arith.subf %13, %16 : vector<8x8x128xf32>
    %18 = math.exp %17 : vector<8x8x128xf32>
    %cst_14 = arith.constant dense<0.000000e+00> : vector<8x8xf32>
    %19 = vector.multi_reduction <add>, %18, %cst_14 [2] : vector<8x8x128xf32> to vector<8x8xf32>
    %20 = vector.shape_cast %19 : vector<8x8xf32> to vector<8x8x1xf32>
    %21 = tpu.reciprocal %20 {approx = true} : vector<8x8x1xf32> -> vector<8x8x1xf32>
    %22 = arith.mulf %20, %21 : vector<8x8x1xf32>
    %cst_15 = arith.constant 2.000000e+00 : f32
    %23 = vector.broadcast %cst_15 : f32 to vector<8x8x1xf32>
    %24 = arith.subf %23, %22 : vector<8x8x1xf32>
    %25 = arith.mulf %21, %24 : vector<8x8x1xf32>
    %26 = arith.truncf %18 : vector<8x8x128xf32> to vector<8x8x128xbf16>
    "tpu.trace_start"() <{level = 10 : i32, message = "bqk,bkd->bqd"}> : () -> ()
    %cst_16 = arith.constant dense<0.000000e+00> : vector<8x8x128xf32>
    %27 = tpu.matmul %26, %12, %cst_16 {dimension_numbers = #tpu.dot_dimension_numbers<[2], [1], [1], [2], [0, 0, 0, 1, 1, 2], [0], [0]>} : vector<8x8x128xbf16>, vector<8x128x128xbf16>, vector<8x8x128xf32> -> vector<8x8x128xf32>
    "tpu.trace_stop"() : () -> ()
    %28 = vector.broadcast %25 : vector<8x8x1xf32> to vector<8x8x128xf32>
    %29 = arith.mulf %27, %28 : vector<8x8x128xf32>
    %c0_17 = arith.constant 0 : index
    %c0_18 = arith.constant 0 : index
    %c0_19 = arith.constant 0 : index
    %30 = vector.load %arg5[%c0_17, %c0_18, %c0_19] : memref<8x8x128xf32, #tpu.memory_space<vmem>>, vector<8x8x128xf32>
    tpu.vector_store %arg5[%c0_17, %c0_18, %c0_19], %29 {strides = array<i32>} : memref<8x8x128xf32, #tpu.memory_space<vmem>>, vector<8x8x128xf32>,
    %c3_i32 = arith.constant 3 : i32
    %31 = arith.cmpi eq, %arg1, %c3_i32 : i32
    %32 = arith.extui %31 : i1 to i32
    %c0_i32_20 = arith.constant 0 : i32
    %33 = arith.cmpi ne, %32, %c0_i32_20 : i32
    scf.if %33 {
      %c0_21 = arith.constant 0 : index
      %c0_22 = arith.constant 0 : index
      %c0_23 = arith.constant 0 : index
      %34 = vector.load %arg5[%c0_21, %c0_22, %c0_23] : memref<8x8x128xf32, #tpu.memory_space<vmem>>, vector<8x8x128xf32>
      %c0_24 = arith.constant 0 : index
      %c0_25 = arith.constant 0 : index
      %c0_26 = arith.constant 0 : index
      %35 = vector.load %arg4[%c0_24, %c0_25, %c0_26] : memref<8x8x128xf32, #tpu.memory_space<vmem>>, vector<8x8x128xf32>
      tpu.vector_store %arg4[%c0_24, %c0_25, %c0_26], %34 {strides = array<i32>} : memref<8x8x128xf32, #tpu.memory_space<vmem>>, vector<8x8x128xf32>,
    } else {
    }
    return
  }
  func.func @transform_0(%arg0: i32, %arg1: i32) -> (i32, i32, i32) {
    %c0_i32 = arith.constant 0 : i32
    %c0_i32_0 = arith.constant 0 : i32
    %c0_i32_1 = arith.constant 0 : i32
    return %arg0, %c0_i32, %c0_i32_0 : i32, i32, i32
  }
  func.func @transform_1(%arg0: i32, %arg1: i32) -> (i32, i32, i32, i32, i32) {
    %c0_i32 = arith.constant 0 : i32
    %c0_i32_0 = arith.constant 0 : i32
    %c0_i32_1 = arith.constant 0 : i32
    %c0_i32_2 = arith.constant 0 : i32
    return %arg1, %c0_i32, %arg0, %c0_i32_0, %c0_i32_1 : i32, i32, i32, i32, i32
  }
  func.func @transform_2(%arg0: i32, %arg1: i32) -> (i32, i32, i32) {
    %c0_i32 = arith.constant 0 : i32
    %c0_i32_0 = arith.constant 0 : i32
    %c0_i32_1 = arith.constant 0 : i32
    return %arg0, %c0_i32, %c0_i32_0 : i32, i32, i32
  }
}

</mosaic_0001>

<bundles_post_ra>
// kernel: tpu_custom_call.1
= control target key start
LH: loop header
LB: loop body
LE: loop exit
PB: predicated region body
PF: predicated region fallthrough
CT: control target
= control target key end

     0   :  { %7 = vsyncpa [#allocation4], 0  ;;  %s3244_s0 = inlined_call_operand.hbm [shape: f32[16,8,128], index: 0, kind: input, shape index: {}]   ;;  %s3245_s1 = inlined_call_operand.hbm [shape: f32[4,2,16,128,128], index: 1, kind: input, shape index: {}]   ;;  %s3246_s2 = inlined_call_operand.hbm [shape: f32[16,8,128], index: 2, kind: output, shape index: {}]  }
   0x1   :  { %9 = vsyncpa [#allocation4 + $0x1], 0 }
   0x2   :  { %10 = vsyncpa [#allocation7], 0 }
   0x3   :  { %12 = vsyncpa [#allocation7 + $0x1], 0 }
   0x4   :  { %13 = vsyncpa [#allocation5], 0 }
   0x5   :  { %15 = vsyncpa [#allocation5 + $0x1], 0  ;;  %s2522_s9 = smov 0   ;;  %s2524_s10 = smov 0  }
   0x6   :  { %s2526_s11 = smov 0   ;;  %s2528_s12 = smov 0  }
   0x7   :  { %s2530_s13 = smov 0   ;;  %s2532_s14 = smov 0  }
   0x8   :  { %s2534_s15 = smov 0   ;;  %s2536_s16 = smov 0  }
   0x9   :  { %s2538_s17 = smov 0   ;;  %s2540_s18 = smov 0  }
   0xa   :  { %s2542_s19 = smov 0  }
   0xb LB: > { %s1573_s20 = sadd.s32 4294967295, %s2492_s19   ;;  %s1574_s21 = sadd.s32 4294967294, %s2492_s19   ;;  %s2492_s19 = sphi %s2542_s19, %s21_s19   ;;  %s2488_s18 = sphi %s2540_s18, %s3278_s18   ;;  %s2484_s17 = sphi %s2538_s17, %s3277_s17   ;;  %s2480_s16 = sphi %s2536_s16, %s3276_s16   ;;  %s2476_s15 = sphi %s2534_s15, %s3275_s15   ;;  %s2472_s14 = sphi %s2532_s14, %s3274_s14   ;;  %s2468_s13 = sphi %s2530_s13, %s3273_s13   ;;  %s2464_s12 = sphi %s2528_s12, %s3272_s12   ;;  %s2460_s11 = sphi %s2526_s11, %s3271_s11   ;;  %s2456_s10 = sphi %s2524_s10, %s3270_s10   ;;  %s2452_s9 = sphi %s2522_s9, %s3269_s9  }
   0xc   : > { %s30_s22 = sadd.s32 1, %s2484_s17  ;;  %s33_s23 = sadd.s32 1, %s2488_s18 }
   0xd   : > { %p31_p0 = scmp.ge.s32.totalorder %s30_s22, 4  ;;  %s40_s24 = sadd.s32 1, %s2472_s14 }
   0xe   : > { %p47_p1 = scmp.ne.s32.totalorder %s2472_s14, %s2468_s13  ;;  %p48_p2 = scmp.eq.s32.totalorder %s2492_s19, 0 }
   0xf   : > { %s3280_s22 = smov (%p31_p0, %s30_s22), 0  ;;  %s3282_s23 = smov (!%p31_p0, %s33_s23), %s2488_s18 }
  0x10   : > { %3251 = sst [smem:[#allocation15_spill]] %s3280_s22  ;;  %p2593_p3 = por %p48_p2, %p47_p1 }
  0x11   : > { %p3247_p4 = scmp.ne.s32.totalorder %s2468_s13, %s2464_s12  ;;  %p35_p5 = scmp.ge.s32.totalorder %s3282_s23, 2 }
  0x12   : > { %p2599_p6 = scmp.eq.s32.totalorder %s1573_s20, 0  ;;  %s63_s27 = ssub.s32 %s2484_s17, %s3280_s22 }
  0x13   : > { %s68_s28 = sadd.s32 1, %s2460_s11  ;;  %s3284_s23 = smov (%p35_p5, %s3282_s23), 0 }
  0x14   : > { %3254 = sst [smem:[#allocation16_spill]] %s3284_s23  ;;  %p2613_p7 = por %p2599_p6, %p3247_p4 }
  0x15   : > { %p75_p8 = scmp.ne.s32.totalorder %s2460_s11, %s2456_s10  ;;  %s37_s30 = ssub.s32 %s2488_s18, %s3284_s23 }
  0x16   : > { %p81_p9 = scmp.ne.s32.totalorder %s2456_s10, %s2452_s9  ;;  %p38_p10 = scmp.eq.s32.totalorder %s37_s30, 0 }
  0x17   : > { %s65_s3 = sor.u32 %s63_s27, %s37_s30  ;;  %p2625_p12 = por %p75_p8, %p48_p2 }
  0x18   : > { %p66_p11 = scmp.eq.s32.totalorder %s65_s3, 0  ;;  %p2637_p13 = por %p81_p9, %p2599_p6 }
  0x19   : > { %s2630_s5 = scalar_select %p38_p10, %s2472_s14, %s40_s24  }
  0x1a   : > { %s2633_s6 = scalar_select %p66_p11, %s2460_s11, %s68_s28  }
  0x1b   : > { %3257 = sst [smem:[#allocation17_spill]] %s2630_s5  ;;  %p105_p0 = scmp.eq.s32.totalorder %s1573_s20, 7 }
  0x1c   : > { %3258 = sst [smem:[#allocation18_spill]] %s2633_s6  ;;  %p111_p5 = scmp.eq.s32.totalorder %s1574_s21, 7 }
  0x1d   : > { %p2644_p4 = por %p105_p0, %p47_p1  ;;  %p3261_p2 = scmp.ne.s32.totalorder %s2468_s13, %s2464_s12 }
  0x1e   : > { %p1576_p10 = scmp.ge.s32.totalorder %s2492_s19, 8 }
  0x1f   : > { %p2651_p8 = por %p111_p5, %p3261_p2  ;;  %s131_s24 = sand.u32 (!%p1576_p10), 1, %s2472_s14  }
  0x20   : > { %127 = sbr.rel (%p1576_p10) target bundleno = 64 (0x40), region = 16  ;;  %s1726_s26 = sshll.u32 (!%p1576_p10), %s2488_s18, 10 }
  0x21   : > { %s3262_s9 = scalar_select %p2651_p8, 1, 0 }
  0x22   : > { %s1577_s20 = sshll.u32 (!%p1576_p10), %s131_s24, 6  ;;  %s141_s28 = scalar_lea.hbm (!%p1576_p10), %s3244_s0, %s1726_s26 }
  0x23   : > { %3263 = sst [smem:[#allocation19_spill]] %s3262_s9  ;;  %s135_s30 = scalar_lea.vmem (!%p1576_p10), [#allocation3], %s1577_s20 }
  0x24   : > { %s142_s3 = sshll.u32 (!%p1576_p10), %s135_s30, 4  ;;  %s132_s23 = scalar_lea.sflag (!%p1576_p10), [#allocation4], %s131_s24  ;;  %s143_s3 = int_to_ptr.vmem [resolvable:$true] %s142_s3 }
  0x25   : > { %s2354_s22 = scalar_lea.vmem %s143_s3, 1024  ;;  %s2494_s5 = smov [#allocation3]  }
  0x26   : > { %p2355_p1 = scmp.ne.s32.totalorder %s143_s3, %s2354_s22  ;;  %s2358_s6 = sshll.u32 %s2494_s5, 4  ;;  %s2359_s6 = int_to_ptr.vmem [resolvable:$false] %s2358_s6 }
  0x27   : > { %s2360_s9 = scalar_lea.vmem %s2359_s6, 2048  ;;  %p2361_p11 = scmp.lt.s32.totalorder %s143_s3, %s2359_s6 }
  0x28   : > { %p2356_p6 = pnand %p2355_p1, %p2593_p3  ;;  %p2362_p0 = scmp.lt.s32.totalorder %s2360_s9, %s2354_s22 }
  0x2a   : > { %p2357_p9 = pneg %p2356_p6  ;;  %p2363_p5 = por %p2362_p0, %p2361_p11 }
  0x2c   : > { %p2364_p2 = pnand %p2363_p5, %p2357_p9 }
  0x2e   : > { %2367 = shalt.err (!%p2364_p2)
}
  0x2f   : > { %s2495_s21 = smov 128   ;;  %s2496_s26 = smov 8  }
  0x30   : > { %2193 = dma.hbm_to_vmem [thread:$0]  (%p2593_p3), %s141_s28, 1024, %s143_s3, %s132_s23, %s2495_s21, %s2495_s21, %s2496_s26  }
  0x31   : > { %s152_s5 = sand.u32 1, %s2460_s11   ;;  %s1727_s6 = sshll.u32 %s2488_s18, 7 }
  0x32   : > { %s1580_s24 = sshll.u32 %s152_s5, 11  ;;  %s1583_s22 = sshll.u32 %s2484_s17, 9 }
  0x33   : > { %s163_s9 = sadd.s32 %s1727_s6, %s1583_s22  ;;  %s156_s20 = scalar_lea.vmem [#allocation6], %s1580_s24 }
  0x34   : > { %s178_s27 = sshll.u32 %s156_s20, 4  ;;  %s2497_s23 = smov 32768   ;;  %s179_s27 = int_to_ptr.vmem [resolvable:$true] %s178_s27 }
  0x35   : > { %s2194_s25 = scalar_select %p2625_p12, [#allocation0], [#allocation11] }
  0x36   : > { %2195 = sst [smem:[#allocation10]] (%p2625_p12), %s2497_s23  ;;  %s1584_s30 = sshll.u32 %s163_s9, 7 }
  0x37   : > { %s170_s28 = sld [smem:[%s2194_s25]]   ;;  %s2498_s3 = smov 16384  }
  0x38   : > { %2196 = sst [smem:[#allocation10 + $0x1]] (%p2625_p12), %s2498_s3  ;;  %s2499_s21 = smov 128  }
  0x39   : > { %2197 = sst [smem:[#allocation10 + $0x2]] (%p2625_p12), %s2499_s21  ;;  %s165_s6 = scalar_lea.hbm %s3245_s1, %s1584_s30 }
  0x3a   : > { %2198 = sst [smem:[#allocation10 + $0x3]] (%p2625_p12), %s2499_s21  ;;  %s2500_s22 = smov 8  }
  0x3b   : > { %2199 = sst [smem:[#allocation10 + $0x4]] (%p2625_p12), %s2499_s21  ;;  %s153_s25 = scalar_lea.sflag [#allocation7], %s152_s5 }
  0x3c   : > { %2200 = sst [smem:[#allocation10 + $0x5]] (%p2625_p12), %s2500_s22  ;;  %s2501_s23 = smov 131072  }
  0x3d   : > { %s1585_s20 = sshll.u32 %s170_s28, 26 }
  0x3e   : > { %s1586_s9 = sadd.s32 134217728, %s1585_s20 }
  0x3f   : > { %2201 = dma.general (%p2625_p12), %s165_s6, 32768, %s179_s27, %s153_s25, %s2501_s23, [#allocation10], %s1586_s9, 0  }
  0x40 PF: > { %p1587_p3 = scmp.ge.s32.totalorder %s2492_s19, 1  ;;  %p199_p10 = scmp.lt.s32.totalorder %s2492_s19, 9 }
  0x42   : > { %p200_p1 = pnand %p1587_p3, %p199_p10 }
  0x43   : > { %s2690_s30 = sand.u32 (!%p200_p1), 1, %s2468_s13  }
  0x44   : > { %203 = sbr.rel (%p200_p1) target bundleno = 928 (0x3a0), region = 28  ;;  %s1588_s3 = sshll.u32 (!%p200_p1), %s2690_s30, 6 }
  0x45   : > { %s206_s28 = scalar_lea.sflag (!%p200_p1), [#allocation4], %s2690_s30  ;;  %s209_s21 = scalar_lea.vmem (!%p200_p1), [#allocation3], %s1588_s3 }
  0x49   : > { %2439 = dma.done.wait (%p2613_p7), %s206_s28, 1024  }
  0x4a   : > { %2441 = vsyncadd (%p2613_p7), %s206_s28, 4294966272  ;;  %s214_s4 = sand.u32 1, %s2456_s10  }
  0x4b   : > { %s1589_s5 = sshll.u32 %s214_s4, 11  ;;  %s215_s27 = scalar_lea.sflag [#allocation7], %s214_s4 }
  0x4c   : > { %s2699_s26 = scalar_lea.vmem [#allocation6], %s1589_s5 }
  0x4d   : > { %2443 = dma.done.wait (%p2637_p13), %s215_s27, 32768  }
  0x4e   : > { %2445 = vsyncadd (%p2637_p13), %s215_s27, 4294934528  ;;  %s2705_s24 = scalar_lea.vmem [#allocation8], %s1588_s3  ;;  %p1591_p12 = scmp.ne.s32.totalorder %s2476_s15, 0 }
  0x50   : > { %251 = sbr.rel (%p1591_p12) target bundleno = 90 (0x5a), region = 40 }
  0x55   : > { %v252_v0 = vld [vmem:[%s209_s21] sm:$0xff]  ;;  %v253_v1 = vld [vmem:[%s209_s21 + $0x8] sm:$0xff]  ;;  %v254_v2 = vld [vmem:[%s209_s21 + $0x10] sm:$0xff] }
  0x56   : > { %260 = vst [vmem:[#allocation2 + $0x30] sm:$0xff] %v252_v0  ;;  %261 = vst [vmem:[#allocation2] sm:$0xff] %v253_v1  ;;  %v255_v3 = vld [vmem:[%s209_s21 + $0x18] sm:$0xff]  ;;  %v256_v4 = vld [vmem:[%s209_s21 + $0x20] sm:$0xff] }
  0x57   : > { %262 = vst [vmem:[#allocation2 + $0x18] sm:$0xff] %v254_v2  ;;  %v257_v5 = vld [vmem:[%s209_s21 + $0x28] sm:$0xff]  ;;  %263 = vst [vmem:[#allocation2 + $0x10] sm:$0xff] %v255_v3  ;;  %v258_v6 = vld [vmem:[%s209_s21 + $0x30] sm:$0xff] }
  0x58   : > { %264 = vst [vmem:[#allocation2 + $0x8] sm:$0xff] %v256_v4  ;;  %265 = vst [vmem:[#allocation2 + $0x20] sm:$0xff] %v257_v5  ;;  %v259_v7 = vld [vmem:[%s209_s21 + $0x38] sm:$0xff] }
  0x59   : > { %266 = vst [vmem:[#allocation2 + $0x28] sm:$0xff] %v258_v6  ;;  %267 = vst [vmem:[#allocation2 + $0x38] sm:$0xff] %v259_v7 }
  0x5a PF: > { %v306_v8 = vld [vmem:[%s2699_s26 + $0x70] sm:$0xff]  ;;  %v307_v9 = vld [vmem:[%s2699_s26 + $0x78] sm:$0xff]  ;;  %v2502_v11 = vmov 0.0   ;;  %vm2503_vm0 = vmmov 0   ;;  %v304_v15 = vld [vmem:[%s2699_s26 + $0x60] sm:$0xff]  ;;  %p1720_p7 = scmp.ne.s32.totalorder %s2476_s15, 3 }
  0x5b   : > { %v322_v10 = vld [vmem:[%s2699_s26 + $0xf0] sm:$0xff]  ;;  %1873 = vmatprep.subr.bf16.mxu0 %v2502_v11  ;;  %1893 = vmatprep.subr.bf16.mxu1 %v2502_v11  ;;  %v427_v12 = vpack.c.bf16 %v307_v9, %v306_v8  ;;  %v323_v13 = vld [vmem:[%s2699_s26 + $0xf8] sm:$0xff]  ;;  %v305_v16 = vld [vmem:[%s2699_s26 + $0x68] sm:$0xff] }
  0x5c   : > { %v435_v14 = vpack.c.bf16 %v323_v13, %v322_v10  ;;  %1889 = vmatprep.mubr.msk.bf16.mxu0 %vm2503_vm0, %v2502_v11  ;;  %1909 = vmatprep.mubr.msk.bf16.mxu1 %vm2503_vm0, %v2502_v11  ;;  %v320_v17 = vld [vmem:[%s2699_s26 + $0xe0] sm:$0xff]  ;;  %v321_v18 = vld [vmem:[%s2699_s26 + $0xe8] sm:$0xff]  ;;  %v426_v19 = vpack.c.bf16 %v305_v16, %v304_v15  ;;  %v302_v21 = vld [vmem:[%s2699_s26 + $0x50] sm:$0xff] }
  0x5d   : > { %1874 = vmatpush3.bf16.xpose.msra.mxu0 %v427_v12  ;;  %v434_v20 = vpack.c.bf16 %v321_v18, %v320_v17  ;;  %v303_v22 = vld [vmem:[%s2699_s26 + $0x58] sm:$0xff]  ;;  %v318_v23 = vld [vmem:[%s2699_s26 + $0xd0] sm:$0xff]  ;;  %v300_v27 = vld [vmem:[%s2699_s26 + $0x40] sm:$0xff] }
  0x5e   : > { %1894 = vmatpush3.bf16.xpose.msra.mxu1 %v435_v14  ;;  %1875 = vmatprep.subr.bf16.mxu0 %v2502_v11  ;;  %v319_v24 = vld [vmem:[%s2699_s26 + $0xd8] sm:$0xff]  ;;  %v425_v25 = vpack.c.bf16 %v303_v22, %v302_v21  ;;  %v301_v28 = vld [vmem:[%s2699_s26 + $0x48] sm:$0xff]  ;;  %v316_v29 = vld [vmem:[%s2699_s26 + $0xc0] sm:$0xff] }
  0x5f   : > { %1895 = vmatprep.subr.bf16.mxu1 %v2502_v11  ;;  %v433_v26 = vpack.c.bf16 %v319_v24, %v318_v23  ;;  %v317_v30 = vld [vmem:[%s2699_s26 + $0xc8] sm:$0xff]  ;;  %v424_v31 = vpack.c.bf16 %v301_v28, %v300_v27  ;;  %v298_v33 = vld [vmem:[%s2699_s26 + $0x30] sm:$0xff]  ;;  %v299_v34 = vld [vmem:[%s2699_s26 + $0x38] sm:$0xff] }
  0x60   : > { %v432_v32 = vpack.c.bf16 %v317_v30, %v316_v29  ;;  %v314_v35 = vld [vmem:[%s2699_s26 + $0xb0] sm:$0xff]  ;;  %v315_v36 = vld [vmem:[%s2699_s26 + $0xb8] sm:$0xff]  ;;  %v423_v37 = vpack.c.bf16 %v299_v34, %v298_v33  ;;  %v296_v39 = vld [vmem:[%s2699_s26 + $0x20] sm:$0xff] }
  0x61   : > { %v431_v38 = vpack.c.bf16 %v315_v36, %v314_v35  ;;  %v297_v40 = vld [vmem:[%s2699_s26 + $0x28] sm:$0xff]  ;;  %v312_v41 = vld [vmem:[%s2699_s26 + $0xa0] sm:$0xff]  ;;  %v294_v45 = vld [vmem:[%s2699_s26 + $0x10] sm:$0xff] }
  0x62   : > { %v313_v42 = vld [vmem:[%s2699_s26 + $0xa8] sm:$0xff]  ;;  %v422_v43 = vpack.c.bf16 %v297_v40, %v296_v39  ;;  %v295_v46 = vld [vmem:[%s2699_s26 + $0x18] sm:$0xff]  ;;  %v310_v47 = vld [vmem:[%s2699_s26 + $0x90] sm:$0xff] }
  0x63   : > { %v430_v44 = vpack.c.bf16 %v313_v42, %v312_v41  ;;  %v311_v48 = vld [vmem:[%s2699_s26 + $0x98] sm:$0xff]  ;;  %v421_v49 = vpack.c.bf16 %v295_v46, %v294_v45  ;;  %v292_v51 = vld [vmem:[%s2699_s26] sm:$0xff]  ;;  %v293_v52 = vld [vmem:[%s2699_s26 + $0x8] sm:$0xff] }
  0x64   : > { %v429_v50 = vpack.c.bf16 %v311_v48, %v310_v47  ;;  %v308_v53 = vld [vmem:[%s2699_s26 + $0x80] sm:$0xff]  ;;  %v309_v54 = vld [vmem:[%s2699_s26 + $0x88] sm:$0xff]  ;;  %v420_v55 = vpack.c.bf16 %v293_v52, %v292_v51  ;;  %v268_v56 = vld [vmem:[#allocation2 + $0x30] sm:$0xff] }
  0x65   : > { %1876 = vmatpush3.bf16.xpose.msra.mxu0 %v426_v19  ;;  %v428_v57 = vpack.c.bf16 %v309_v54, %v308_v53  ;;  %v269_v58 = vld [vmem:[#allocation2] sm:$0xff]  ;;  %v276_v59 = vmul.f32 0.088388346, %v268_v56  ;;  %v338_v61 = vld [vmem:[%s2699_s26 + $0x170] sm:$0xff]  ;;  %v339_v62 = vld [vmem:[%s2699_s26 + $0x178] sm:$0xff] }
  0x66   : > { %1896 = vmatpush3.bf16.xpose.msra.mxu1 %v434_v20  ;;  %1877 = vmatprep.subr.bf16.mxu0 %v2502_v11  ;;  %v277_v60 = vmul.f32 0.088388346, %v269_v58  ;;  %v354_v63 = vld [vmem:[%s2699_s26 + $0x1f0] sm:$0xff]  ;;  %v355_v0 = vld [vmem:[%s2699_s26 + $0x1f8] sm:$0xff]  ;;  %v443_v3 = vpack.c.bf16 %v339_v62, %v338_v61  ;;  %v336_v5 = vld [vmem:[%s2699_s26 + $0x160] sm:$0xff] }
  0x67   : > { %1897 = vmatprep.subr.bf16.mxu1 %v2502_v11  ;;  %v284_v1 = vpack.c.bf16 %v276_v59, %v276_v59  ;;  %v451_v4 = vpack.c.bf16 %v355_v0, %v354_v63  ;;  %v337_v6 = vld [vmem:[%s2699_s26 + $0x168] sm:$0xff]  ;;  %v352_v7 = vld [vmem:[%s2699_s26 + $0x1e0] sm:$0xff]  ;;  %v334_v12 = vld [vmem:[%s2699_s26 + $0x150] sm:$0xff] }
  0x68   : > { %v285_v2 = vpack.c.bf16 %v277_v60, %v277_v60  ;;  %v353_v8 = vld [vmem:[%s2699_s26 + $0x1e8] sm:$0xff]  ;;  %v442_v9 = vpack.c.bf16 %v337_v6, %v336_v5  ;;  %v335_v13 = vld [vmem:[%s2699_s26 + $0x158] sm:$0xff]  ;;  %v350_v14 = vld [vmem:[%s2699_s26 + $0x1d0] sm:$0xff] }
  0x69   : > { %v450_v10 = vpack.c.bf16 %v353_v8, %v352_v7  ;;  %v351_v15 = vld [vmem:[%s2699_s26 + $0x1d8] sm:$0xff]  ;;  %v441_v16 = vpack.c.bf16 %v335_v13, %v334_v12  ;;  %v332_v18 = vld [vmem:[%s2699_s26 + $0x140] sm:$0xff]  ;;  %v333_v19 = vld [vmem:[%s2699_s26 + $0x148] sm:$0xff] }
  0x6a   : > { %v449_v17 = vpack.c.bf16 %v351_v15, %v350_v14  ;;  %v348_v20 = vld [vmem:[%s2699_s26 + $0x1c0] sm:$0xff]  ;;  %v349_v21 = vld [vmem:[%s2699_s26 + $0x1c8] sm:$0xff]  ;;  %v440_v22 = vpack.c.bf16 %v333_v19, %v332_v18  ;;  %v330_v24 = vld [vmem:[%s2699_s26 + $0x130] sm:$0xff] }
  0x6b   : > { %v448_v23 = vpack.c.bf16 %v349_v21, %v348_v20  ;;  %v347_v27 = vld [vmem:[%s2699_s26 + $0x1b8] sm:$0xff]  ;;  %v328_v30 = vld [vmem:[%s2699_s26 + $0x120] sm:$0xff]  ;;  %v345_v33 = vld [vmem:[%s2699_s26 + $0x1a8] sm:$0xff] }
  0x6c   : > { %v326_v36 = vld [vmem:[%s2699_s26 + $0x110] sm:$0xff]  ;;  %v343_v39 = vld [vmem:[%s2699_s26 + $0x198] sm:$0xff]  ;;  %v324_v42 = vld [vmem:[%s2699_s26 + $0x100] sm:$0xff] }
  0x6d   : > { %1878 = vmatpush3.bf16.xpose.msra.mxu0 %v425_v25  ;;  %v331_v25 = vld [vmem:[%s2699_s26 + $0x138] sm:$0xff]  ;;  %v341_v45 = vld [vmem:[%s2699_s26 + $0x188] sm:$0xff]  ;;  %v370_v52 = vld [vmem:[%s2699_s26 + $0x270] sm:$0xff] }
  0x6e   : > { %1898 = vmatpush3.bf16.xpose.msra.mxu1 %v433_v26  ;;  %1879 = vmatprep.subr.bf16.mxu0 %v2502_v11  ;;  %v346_v26 = vld [vmem:[%s2699_s26 + $0x1b0] sm:$0xff]  ;;  %v439_v28 = vpack.c.bf16 %v331_v25, %v330_v24  ;;  %v270_v47 = vld [vmem:[#allocation2 + $0x18] sm:$0xff]  ;;  %v368_v60 = vld [vmem:[%s2699_s26 + $0x260] sm:$0xff] }
  0x6f   : > { %1899 = vmatprep.subr.bf16.mxu1 %v2502_v11  ;;  %v447_v29 = vpack.c.bf16 %v347_v27, %v346_v26  ;;  %v371_v53 = vld [vmem:[%s2699_s26 + $0x278] sm:$0xff]  ;;  %v386_v54 = vld [vmem:[%s2699_s26 + $0x2f0] sm:$0xff]  ;;  %v369_v61 = vld [vmem:[%s2699_s26 + $0x268] sm:$0xff] }
  0x70   : > { %v459_v58 = vpack.c.bf16 %v371_v53, %v370_v52  ;;  %v384_v62 = vld [vmem:[%s2699_s26 + $0x2e0] sm:$0xff]  ;;  %v385_v63 = vld [vmem:[%s2699_s26 + $0x2e8] sm:$0xff]  ;;  %v458_v0 = vpack.c.bf16 %v369_v61, %v368_v60  ;;  %v383_v5 = vld [vmem:[%s2699_s26 + $0x2d8] sm:$0xff] }
  0x71   : > { %v364_v8 = vld [vmem:[%s2699_s26 + $0x240] sm:$0xff]  ;;  %v381_v12 = vld [vmem:[%s2699_s26 + $0x2c8] sm:$0xff]  ;;  %v362_v15 = vld [vmem:[%s2699_s26 + $0x230] sm:$0xff] }
  0x72   : > { %v379_v18 = vld [vmem:[%s2699_s26 + $0x2b8] sm:$0xff]  ;;  %v360_v21 = vld [vmem:[%s2699_s26 + $0x220] sm:$0xff]  ;;  %v377_v24 = vld [vmem:[%s2699_s26 + $0x2a8] sm:$0xff] }
  0x73   : > { %v358_v27 = vld [vmem:[%s2699_s26 + $0x210] sm:$0xff]  ;;  %v401_v52 = vld [vmem:[%s2699_s26 + $0x368] sm:$0xff]  ;;  %v416_v53 = vld [vmem:[%s2699_s26 + $0x3e0] sm:$0xff] }
  0x74   : > { %v415_v60 = vld [vmem:[%s2699_s26 + $0x3d8] sm:$0xff] }
  0x75   : > { %1880 = vmatpush3.bf16.xpose.msra.mxu0 %v424_v31  ;;  %v329_v31 = vld [vmem:[%s2699_s26 + $0x128] sm:$0xff] }
  0x76   : > { %1900 = vmatpush3.bf16.xpose.msra.mxu1 %v432_v32  ;;  %1881 = vmatprep.subr.bf16.mxu0 %v2502_v11  ;;  %v344_v32 = vld [vmem:[%s2699_s26 + $0x1a0] sm:$0xff]  ;;  %v438_v34 = vpack.c.bf16 %v329_v31, %v328_v30  ;;  %v375_v30 = vld [vmem:[%s2699_s26 + $0x298] sm:$0xff] }
  0x77   : > { %1901 = vmatprep.subr.bf16.mxu1 %v2502_v11  ;;  %v446_v35 = vpack.c.bf16 %v345_v33, %v344_v32  ;;  %v356_v33 = vld [vmem:[%s2699_s26 + $0x200] sm:$0xff] }
  0x7d   : > { %1882 = vmatpush3.bf16.xpose.msra.mxu0 %v423_v37  ;;  %v327_v37 = vld [vmem:[%s2699_s26 + $0x118] sm:$0xff] }
  0x7e   : > { %1902 = vmatpush3.bf16.xpose.msra.mxu1 %v431_v38  ;;  %1883 = vmatprep.subr.bf16.mxu0 %v2502_v11  ;;  %v342_v38 = vld [vmem:[%s2699_s26 + $0x190] sm:$0xff]  ;;  %v437_v40 = vpack.c.bf16 %v327_v37, %v326_v36  ;;  %v373_v36 = vld [vmem:[%s2699_s26 + $0x288] sm:$0xff] }
  0x7f   : > { %1903 = vmatprep.subr.bf16.mxu1 %v2502_v11  ;;  %v445_v41 = vpack.c.bf16 %v343_v39, %v342_v38  ;;  %v272_v38 = vld [vmem:[#allocation2 + $0x8] sm:$0xff] }
  0x85   : > { %1884 = vmatpush3.bf16.xpose.msra.mxu0 %v422_v43  ;;  %v325_v43 = vld [vmem:[%s2699_s26 + $0x108] sm:$0xff] }
  0x86   : > { %1904 = vmatpush3.bf16.xpose.msra.mxu1 %v430_v44  ;;  %1885 = vmatprep.subr.bf16.mxu0 %v2502_v11  ;;  %v340_v44 = vld [vmem:[%s2699_s26 + $0x180] sm:$0xff]  ;;  %v436_v46 = vpack.c.bf16 %v325_v43, %v324_v42  ;;  %v402_v43 = vld [vmem:[%s2699_s26 + $0x370] sm:$0xff] }
  0x87   : > { %1905 = vmatprep.subr.bf16.mxu1 %v2502_v11  ;;  %v444_v48 = vpack.c.bf16 %v341_v45, %v340_v44  ;;  %v403_v44 = vld [vmem:[%s2699_s26 + $0x378] sm:$0xff]  ;;  %v418_v45 = vld [vmem:[%s2699_s26 + $0x3f0] sm:$0xff] }
  0x8d   : > { %1886 = vmatpush3.bf16.xpose.msra.mxu0 %v421_v49  ;;  %v271_v49 = vld [vmem:[#allocation2 + $0x10] sm:$0xff] }
  0x8e   : > { %1906 = vmatpush3.bf16.xpose.msra.mxu1 %v429_v50  ;;  %1887 = vmatprep.subr.bf16.mxu0 %v2502_v11  ;;  %v278_v50 = vmul.f32 0.088388346, %v270_v47  ;;  %v279_v51 = vmul.f32 0.088388346, %v271_v49  ;;  %v475_v49 = vpack.c.bf16 %v403_v44, %v402_v43  ;;  %v1605_v43 = vld [vmem:[%s2699_s26 + $0x468] sm:$0xff]  ;;  %v1622_v44 = vld [vmem:[%s2699_s26 + $0x4f0] sm:$0xff] }
  0x8f   : > { %1907 = vmatprep.subr.bf16.mxu1 %v2502_v11 }
  0x90   : > { %v286_v56 = vpack.c.bf16 %v278_v50, %v278_v50 }
  0x95   : > { %1888 = vmatpush3.bf16.xpose.msra.mxu0 %v420_v55  ;;  %v387_v55 = vld [vmem:[%s2699_s26 + $0x2f8] sm:$0xff] }
  0x96   : > { %1908 = vmatpush3.bf16.xpose.msra.mxu1 %v428_v57  ;;  %1913 = vmatprep.subr.bf16.mxu0 %v2502_v11  ;;  %v287_v57 = vpack.c.bf16 %v279_v51, %v279_v51  ;;  %v467_v59 = vpack.c.bf16 %v387_v55, %v386_v54  ;;  %v400_v51 = vld [vmem:[%s2699_s26 + $0x360] sm:$0xff]  ;;  %v417_v54 = vld [vmem:[%s2699_s26 + $0x3e8] sm:$0xff] }
  0x97   : > { %1933 = vmatprep.subr.bf16.mxu1 %v2502_v11  ;;  %v474_v55 = vpack.c.bf16 %v401_v52, %v400_v51  ;;  %v1602_v52 = vld [vmem:[%s2699_s26 + $0x450] sm:$0xff] }
  0x9c   : > { %1890 = vmatmul.mubr.bf16.vlgmr.msra.gmra.mxu0 %v284_v1  ;;  %v466_v1 = vpack.c.bf16 %v385_v63, %v384_v62  ;;  %v396_v63 = vld [vmem:[%s2699_s26 + $0x340] sm:$0xff] }
  0x9d   : > { %1910 = vmatmul.mubr.bf16.vlgmr.msra.gmra.mxu1 %v285_v2  ;;  %1914 = vmatpush3.bf16.xpose.msra.mxu0 %v443_v3  ;;  %v366_v2 = vld [vmem:[%s2699_s26 + $0x250] sm:$0xff]  ;;  %v367_v3 = vld [vmem:[%s2699_s26 + $0x258] sm:$0xff] }
  0x9e   : > { %1934 = vmatpush3.bf16.xpose.msra.mxu1 %v451_v4  ;;  %1915 = vmatprep.subr.bf16.mxu0 %v2502_v11  ;;  %v382_v4 = vld [vmem:[%s2699_s26 + $0x2d0] sm:$0xff]  ;;  %v457_v6 = vpack.c.bf16 %v367_v3, %v366_v2  ;;  %v413_v2 = vld [vmem:[%s2699_s26 + $0x3c8] sm:$0xff] }
  0x9f   : > { %1935 = vmatprep.subr.bf16.mxu1 %v2502_v11  ;;  %1929 = vmatprep.mubr.msk.bf16.mxu0 %vm2503_vm0, %v2502_v11  ;;  %v465_v7 = vpack.c.bf16 %v383_v5, %v382_v4  ;;  %v394_v5 = vld [vmem:[%s2699_s26 + $0x330] sm:$0xff] }
  0xa0   : > { %1949 = vmatprep.mubr.msk.bf16.mxu1 %vm2503_vm0, %v2502_v11 }
  0xa5   : > { %1916 = vmatpush3.bf16.xpose.msra.mxu0 %v442_v9  ;;  %v365_v9 = vld [vmem:[%s2699_s26 + $0x248] sm:$0xff] }
  0xa6   : > { %1936 = vmatpush3.bf16.xpose.msra.mxu1 %v450_v10  ;;  %1917 = vmatprep.subr.bf16.mxu0 %v2502_v11  ;;  %v380_v10 = vld [vmem:[%s2699_s26 + $0x2c0] sm:$0xff]  ;;  %v456_v13 = vpack.c.bf16 %v365_v9, %v364_v8  ;;  %v411_v8 = vld [vmem:[%s2699_s26 + $0x3b8] sm:$0xff] }
  0xa7   : > { %1937 = vmatprep.subr.bf16.mxu1 %v2502_v11  ;;  %v464_v14 = vpack.c.bf16 %v381_v12, %v380_v10  ;;  %v392_v12 = vld [vmem:[%s2699_s26 + $0x320] sm:$0xff] }
  0xad   : > { %1918 = vmatpush3.bf16.xpose.msra.mxu0 %v441_v16  ;;  %v363_v16 = vld [vmem:[%s2699_s26 + $0x238] sm:$0xff] }
  0xae   : > { %1938 = vmatpush3.bf16.xpose.msra.mxu1 %v449_v17  ;;  %1919 = vmatprep.subr.bf16.mxu0 %v2502_v11  ;;  %v378_v17 = vld [vmem:[%s2699_s26 + $0x2b0] sm:$0xff]  ;;  %v455_v19 = vpack.c.bf16 %v363_v16, %v362_v15  ;;  %v409_v15 = vld [vmem:[%s2699_s26 + $0x3a8] sm:$0xff] }
  0xaf   : > { %1939 = vmatprep.subr.bf16.mxu1 %v2502_v11  ;;  %v463_v20 = vpack.c.bf16 %v379_v18, %v378_v17  ;;  %v390_v18 = vld [vmem:[%s2699_s26 + $0x310] sm:$0xff] }
  0xb5   : > { %1920 = vmatpush3.bf16.xpose.msra.mxu0 %v440_v22  ;;  %v361_v22 = vld [vmem:[%s2699_s26 + $0x228] sm:$0xff] }
  0xb6   : > { %1940 = vmatpush3.bf16.xpose.msra.mxu1 %v448_v23  ;;  %1921 = vmatprep.subr.bf16.mxu0 %v2502_v11  ;;  %v376_v23 = vld [vmem:[%s2699_s26 + $0x2a0] sm:$0xff]  ;;  %v454_v25 = vpack.c.bf16 %v361_v22, %v360_v21  ;;  %v407_v21 = vld [vmem:[%s2699_s26 + $0x398] sm:$0xff] }
  0xb7   : > { %1941 = vmatprep.subr.bf16.mxu1 %v2502_v11  ;;  %v462_v26 = vpack.c.bf16 %v377_v24, %v376_v23  ;;  %v388_v24 = vld [vmem:[%s2699_s26 + $0x300] sm:$0xff] }
  0xbd   : > { %1922 = vmatpush3.bf16.xpose.msra.mxu0 %v439_v28  ;;  %v359_v28 = vld [vmem:[%s2699_s26 + $0x218] sm:$0xff] }
  0xbe   : > { %1942 = vmatpush3.bf16.xpose.msra.mxu1 %v447_v29  ;;  %1923 = vmatprep.subr.bf16.mxu0 %v2502_v11  ;;  %v374_v29 = vld [vmem:[%s2699_s26 + $0x290] sm:$0xff]  ;;  %v453_v31 = vpack.c.bf16 %v359_v28, %v358_v27  ;;  %v405_v27 = vld [vmem:[%s2699_s26 + $0x388] sm:$0xff] }
  0xbf   : > { %1943 = vmatprep.subr.bf16.mxu1 %v2502_v11  ;;  %v461_v32 = vpack.c.bf16 %v375_v30, %v374_v29  ;;  %v274_v29 = vld [vmem:[#allocation2 + $0x28] sm:$0xff] }
  0xc5   : > { %1924 = vmatpush3.bf16.xpose.msra.mxu0 %v438_v34  ;;  %v357_v34 = vld [vmem:[%s2699_s26 + $0x208] sm:$0xff] }
  0xc6   : > { %1944 = vmatpush3.bf16.xpose.msra.mxu1 %v446_v35  ;;  %1925 = vmatprep.subr.bf16.mxu0 %v2502_v11  ;;  %v372_v35 = vld [vmem:[%s2699_s26 + $0x280] sm:$0xff]  ;;  %v452_v37 = vpack.c.bf16 %v357_v34, %v356_v33 }
  0xc7   : > { %1945 = vmatprep.subr.bf16.mxu1 %v2502_v11  ;;  %v460_v39 = vpack.c.bf16 %v373_v36, %v372_v35  ;;  %v1606_v36 = vld [vmem:[%s2699_s26 + $0x470] sm:$0xff] }
  0xcd   : > { %1926 = vmatpush3.bf16.xpose.msra.mxu0 %v437_v40  ;;  %v273_v40 = vld [vmem:[#allocation2 + $0x20] sm:$0xff] }
  0xce   : > { %1946 = vmatpush3.bf16.xpose.msra.mxu1 %v445_v41  ;;  %1927 = vmatprep.subr.bf16.mxu0 %v2502_v11  ;;  %v280_v41 = vmul.f32 0.088388346, %v272_v38  ;;  %v281_v42 = vmul.f32 0.088388346, %v273_v40 }
  0xcf   : > { %1947 = vmatprep.subr.bf16.mxu1 %v2502_v11 }
  0xd0   : > { %v288_v47 = vpack.c.bf16 %v280_v41, %v280_v41 }
  0xd5   : > { %1928 = vmatpush3.bf16.xpose.msra.mxu0 %v436_v46  ;;  %v419_v46 = vld [vmem:[%s2699_s26 + $0x3f8] sm:$0xff] }
  0xd6   : > { %1948 = vmatpush3.bf16.xpose.msra.mxu1 %v444_v48  ;;  %1953 = vmatprep.subr.bf16.mxu0 %v2502_v11  ;;  %v289_v48 = vpack.c.bf16 %v281_v42, %v281_v42  ;;  %v483_v50 = vpack.c.bf16 %v419_v46, %v418_v45  ;;  %v1604_v42 = vld [vmem:[%s2699_s26 + $0x460] sm:$0xff] }
  0xd7   : > { %1973 = vmatprep.subr.bf16.mxu1 %v2502_v11  ;;  %v619_v46 = vpack.c.bf16 %v1605_v43, %v1604_v42 }
  0xdc   : > { %1930 = vmatmul.mubr.bf16.vlgmr.msra.gmra.mxu0 %v286_v56  ;;  %v482_v56 = vpack.c.bf16 %v417_v54, %v416_v53  ;;  %v1603_v53 = vld [vmem:[%s2699_s26 + $0x458] sm:$0xff]  ;;  %v1620_v54 = vld [vmem:[%s2699_s26 + $0x4e0] sm:$0xff] }
  0xdd   : > { %1950 = vmatmul.mubr.bf16.vlgmr.msra.gmra.mxu1 %v287_v57  ;;  %1954 = vmatpush3.bf16.xpose.msra.mxu0 %v459_v58  ;;  %v398_v57 = vld [vmem:[%s2699_s26 + $0x350] sm:$0xff]  ;;  %v399_v58 = vld [vmem:[%s2699_s26 + $0x358] sm:$0xff] }
  0xde   : > { %1974 = vmatpush3.bf16.xpose.msra.mxu1 %v467_v59  ;;  %1955 = vmatprep.subr.bf16.mxu0 %v2502_v11  ;;  %v414_v59 = vld [vmem:[%s2699_s26 + $0x3d0] sm:$0xff]  ;;  %v473_v61 = vpack.c.bf16 %v399_v58, %v398_v57  ;;  %v1621_v57 = vld [vmem:[%s2699_s26 + $0x4e8] sm:$0xff] }
  0xdf   : > { %1975 = vmatprep.subr.bf16.mxu1 %v2502_v11  ;;  %1969 = vmatprep.mubr.msk.bf16.mxu0 %vm2503_vm0, %v2502_v11  ;;  %v481_v62 = vpack.c.bf16 %v415_v60, %v414_v59  ;;  %v627_v58 = vpack.c.bf16 %v1621_v57, %v1620_v54  ;;  %v1600_v59 = vld [vmem:[%s2699_s26 + $0x440] sm:$0xff]  ;;  %v1601_v60 = vld [vmem:[%s2699_s26 + $0x448] sm:$0xff]  ;;  %v1639_v54 = vld [vmem:[%s2699_s26 + $0x578] sm:$0xff] }
  0xe0   : > { %1989 = vmatprep.mubr.msk.bf16.mxu1 %vm2503_vm0, %v2502_v11  ;;  %v1636_v57 = vld [vmem:[%s2699_s26 + $0x560] sm:$0xff] }
  0xe5   : > { %1956 = vmatpush3.bf16.xpose.msra.mxu0 %v458_v0  ;;  %v397_v0 = vld [vmem:[%s2699_s26 + $0x348] sm:$0xff] }
  0xe6   : > { %1976 = vmatpush3.bf16.xpose.msra.mxu1 %v466_v1  ;;  %1957 = vmatprep.subr.bf16.mxu0 %v2502_v11  ;;  %v412_v1 = vld [vmem:[%s2699_s26 + $0x3c0] sm:$0xff]  ;;  %v472_v3 = vpack.c.bf16 %v397_v0, %v396_v63  ;;  %v1619_v63 = vld [vmem:[%s2699_s26 + $0x4d8] sm:$0xff] }
  0xe7   : > { %1977 = vmatprep.subr.bf16.mxu1 %v2502_v11  ;;  %v480_v4 = vpack.c.bf16 %v413_v2, %v412_v1  ;;  %v1598_v1 = vld [vmem:[%s2699_s26 + $0x430] sm:$0xff]  ;;  %v1599_v2 = vld [vmem:[%s2699_s26 + $0x438] sm:$0xff] }
  0xed   : > { %1958 = vmatpush3.bf16.xpose.msra.mxu0 %v457_v6  ;;  %v395_v6 = vld [vmem:[%s2699_s26 + $0x338] sm:$0xff] }
  0xee   : > { %1978 = vmatpush3.bf16.xpose.msra.mxu1 %v465_v7  ;;  %1959 = vmatprep.subr.bf16.mxu0 %v2502_v11  ;;  %v410_v7 = vld [vmem:[%s2699_s26 + $0x3b0] sm:$0xff]  ;;  %v471_v9 = vpack.c.bf16 %v395_v6, %v394_v5  ;;  %v1617_v5 = vld [vmem:[%s2699_s26 + $0x4c8] sm:$0xff] }
  0xef   : > { %1979 = vmatprep.subr.bf16.mxu1 %v2502_v11  ;;  %v479_v10 = vpack.c.bf16 %v411_v8, %v410_v7  ;;  %v1596_v7 = vld [vmem:[%s2699_s26 + $0x420] sm:$0xff]  ;;  %v1597_v8 = vld [vmem:[%s2699_s26 + $0x428] sm:$0xff] }
  0xf5   : > { %1960 = vmatpush3.bf16.xpose.msra.mxu0 %v456_v13  ;;  %v393_v13 = vld [vmem:[%s2699_s26 + $0x328] sm:$0xff] }
  0xf6   : > { %1980 = vmatpush3.bf16.xpose.msra.mxu1 %v464_v14  ;;  %1961 = vmatprep.subr.bf16.mxu0 %v2502_v11  ;;  %v408_v14 = vld [vmem:[%s2699_s26 + $0x3a0] sm:$0xff]  ;;  %v470_v16 = vpack.c.bf16 %v393_v13, %v392_v12  ;;  %v1615_v12 = vld [vmem:[%s2699_s26 + $0x4b8] sm:$0xff]  ;;  %v1594_v13 = vld [vmem:[%s2699_s26 + $0x410] sm:$0xff] }
  0xf7   : > { %1981 = vmatprep.subr.bf16.mxu1 %v2502_v11  ;;  %v478_v17 = vpack.c.bf16 %v409_v15, %v408_v14  ;;  %v1595_v14 = vld [vmem:[%s2699_s26 + $0x418] sm:$0xff] }
  0xfd   : > { %1962 = vmatpush3.bf16.xpose.msra.mxu0 %v455_v19  ;;  %v391_v19 = vld [vmem:[%s2699_s26 + $0x318] sm:$0xff] }
  0xfe   : > { %1982 = vmatpush3.bf16.xpose.msra.mxu1 %v463_v20  ;;  %1963 = vmatprep.subr.bf16.mxu0 %v2502_v11  ;;  %v406_v20 = vld [vmem:[%s2699_s26 + $0x390] sm:$0xff]  ;;  %v469_v22 = vpack.c.bf16 %v391_v19, %v390_v18  ;;  %v614_v18 = vpack.c.bf16 %v1595_v14, %v1594_v13  ;;  %v1631_v14 = vld [vmem:[%s2699_s26 + $0x538] sm:$0xff] }
  0xff   : > { %1983 = vmatprep.subr.bf16.mxu1 %v2502_v11  ;;  %v477_v23 = vpack.c.bf16 %v407_v21, %v406_v20  ;;  %v1592_v20 = vld [vmem:[%s2699_s26 + $0x400] sm:$0xff]  ;;  %v1593_v21 = vld [vmem:[%s2699_s26 + $0x408] sm:$0xff]  ;;  %v1630_v13 = vld [vmem:[%s2699_s26 + $0x530] sm:$0xff] }
 0x105   : > { %1964 = vmatpush3.bf16.xpose.msra.mxu0 %v454_v25  ;;  %v389_v25 = vld [vmem:[%s2699_s26 + $0x308] sm:$0xff] }
 0x106   : > { %1984 = vmatpush3.bf16.xpose.msra.mxu1 %v462_v26  ;;  %1965 = vmatprep.subr.bf16.mxu0 %v2502_v11  ;;  %v404_v26 = vld [vmem:[%s2699_s26 + $0x380] sm:$0xff]  ;;  %v468_v28 = vpack.c.bf16 %v389_v25, %v388_v24  ;;  %v613_v24 = vpack.c.bf16 %v1593_v21, %v1592_v20  ;;  %v1629_v20 = vld [vmem:[%s2699_s26 + $0x528] sm:$0xff]  ;;  %v1646_v21 = vld [vmem:[%s2699_s26 + $0x5b0] sm:$0xff] }
 0x107   : > { %1985 = vmatprep.subr.bf16.mxu1 %v2502_v11  ;;  %v476_v30 = vpack.c.bf16 %v405_v27, %v404_v26  ;;  %v1608_v26 = vld [vmem:[%s2699_s26 + $0x480] sm:$0xff]  ;;  %v1609_v27 = vld [vmem:[%s2699_s26 + $0x488] sm:$0xff] }
 0x10d   : > { %1966 = vmatpush3.bf16.xpose.msra.mxu0 %v453_v31  ;;  %v275_v31 = vld [vmem:[#allocation2 + $0x38] sm:$0xff] }
 0x10e   : > { %1986 = vmatpush3.bf16.xpose.msra.mxu1 %v461_v32  ;;  %1967 = vmatprep.subr.bf16.mxu0 %v2502_v11  ;;  %v282_v32 = vmul.f32 0.088388346, %v274_v29  ;;  %v283_v33 = vmul.f32 0.088388346, %v275_v31 }
 0x10f   : > { %1987 = vmatprep.subr.bf16.mxu1 %v2502_v11 }
 0x110   : > { %v290_v34 = vpack.c.bf16 %v282_v32, %v282_v32  ;;  %v291_v35 = vpack.c.bf16 %v283_v33, %v283_v33 }
 0x115   : > { %1968 = vmatpush3.bf16.xpose.msra.mxu0 %v452_v37  ;;  %v1607_v37 = vld [vmem:[%s2699_s26 + $0x478] sm:$0xff] }
 0x116   : > { %1988 = vmatpush3.bf16.xpose.msra.mxu1 %v460_v39  ;;  %1993 = vmatprep.subr.bf16.mxu0 %v2502_v11  ;;  %v620_v38 = vpack.c.bf16 %v1607_v37, %v1606_v36 }
 0x117   : > { %2013 = vmatprep.subr.bf16.mxu1 %v2502_v11 }
 0x11c   : > { %1970 = vmatmul.mubr.bf16.vlgmr.msra.gmra.mxu0 %v288_v47  ;;  %v1623_v47 = vld [vmem:[%s2699_s26 + $0x4f8] sm:$0xff] }
 0x11d   : > { %1990 = vmatmul.mubr.bf16.vlgmr.msra.gmra.mxu1 %v289_v48  ;;  %1994 = vmatpush3.bf16.xpose.msra.mxu0 %v475_v49  ;;  %v628_v49 = vpack.c.bf16 %v1623_v47, %v1622_v44 }
 0x11e   : > { %2014 = vmatpush3.bf16.xpose.msra.mxu1 %v483_v50  ;;  %1995 = vmatprep.subr.bf16.mxu0 %v2502_v11 }
 0x11f   : > { %2015 = vmatprep.subr.bf16.mxu1 %v2502_v11  ;;  %2009 = vmatprep.mubr.msk.bf16.mxu0 %vm2503_vm0, %v2502_v11 }
 0x120   : > { %2029 = vmatprep.mubr.msk.bf16.mxu1 %vm2503_vm0, %v2502_v11 }
 0x125   : > { %1996 = vmatpush3.bf16.xpose.msra.mxu0 %v474_v55 }
 0x126   : > { %2016 = vmatpush3.bf16.xpose.msra.mxu1 %v482_v56  ;;  %1997 = vmatprep.subr.bf16.mxu0 %v2502_v11  ;;  %v618_v56 = vpack.c.bf16 %v1603_v53, %v1602_v52  ;;  %v1638_v53 = vld [vmem:[%s2699_s26 + $0x570] sm:$0xff] }
 0x127   : > { %2017 = vmatprep.subr.bf16.mxu1 %v2502_v11 }
 0x12d   : > { %1998 = vmatpush3.bf16.xpose.msra.mxu0 %v473_v61  ;;  %v1618_v61 = vld [vmem:[%s2699_s26 + $0x4d0] sm:$0xff] }
 0x12e   : > { %2018 = vmatpush3.bf16.xpose.msra.mxu1 %v481_v62  ;;  %1999 = vmatprep.subr.bf16.mxu0 %v2502_v11  ;;  %v617_v62 = vpack.c.bf16 %v1601_v60, %v1600_v59  ;;  %v626_v0 = vpack.c.bf16 %v1619_v63, %v1618_v61  ;;  %v1654_v59 = vld [vmem:[%s2699_s26 + $0x5f0] sm:$0xff]  ;;  %v1655_v60 = vld [vmem:[%s2699_s26 + $0x5f8] sm:$0xff] }
 0x12f   : > { %2019 = vmatprep.subr.bf16.mxu1 %v2502_v11  ;;  %v1634_v63 = vld [vmem:[%s2699_s26 + $0x550] sm:$0xff] }
 0x135   : > { %2000 = vmatpush3.bf16.xpose.msra.mxu0 %v472_v3  ;;  %v1616_v3 = vld [vmem:[%s2699_s26 + $0x4c0] sm:$0xff] }
 0x136   : > { %2020 = vmatpush3.bf16.xpose.msra.mxu1 %v480_v4  ;;  %2001 = vmatprep.subr.bf16.mxu0 %v2502_v11  ;;  %v616_v4 = vpack.c.bf16 %v1599_v2, %v1598_v1  ;;  %v625_v6 = vpack.c.bf16 %v1617_v5, %v1616_v3  ;;  %v1635_v1 = vld [vmem:[%s2699_s26 + $0x558] sm:$0xff]  ;;  %v1652_v2 = vld [vmem:[%s2699_s26 + $0x5e0] sm:$0xff]  ;;  %v1653_v3 = vld [vmem:[%s2699_s26 + $0x5e8] sm:$0xff] }
 0x137   : > { %2021 = vmatprep.subr.bf16.mxu1 %v2502_v11  ;;  %v643_v5 = vpack.c.bf16 %v1653_v3, %v1652_v2 }
 0x13d   : > { %2002 = vmatpush3.bf16.xpose.msra.mxu0 %v471_v9  ;;  %v1614_v9 = vld [vmem:[%s2699_s26 + $0x4b0] sm:$0xff] }
 0x13e   : > { %2022 = vmatpush3.bf16.xpose.msra.mxu1 %v479_v10  ;;  %2003 = vmatprep.subr.bf16.mxu0 %v2502_v11  ;;  %v615_v10 = vpack.c.bf16 %v1597_v8, %v1596_v7  ;;  %v624_v15 = vpack.c.bf16 %v1615_v12, %v1614_v9  ;;  %v1633_v7 = vld [vmem:[%s2699_s26 + $0x548] sm:$0xff]  ;;  %v1650_v8 = vld [vmem:[%s2699_s26 + $0x5d0] sm:$0xff]  ;;  %v1651_v9 = vld [vmem:[%s2699_s26 + $0x5d8] sm:$0xff] }
 0x13f   : > { %2023 = vmatprep.subr.bf16.mxu1 %v2502_v11  ;;  %v642_v12 = vpack.c.bf16 %v1651_v9, %v1650_v8  ;;  %v1667_v8 = vld [vmem:[%s2699_s26 + $0x658] sm:$0xff] }
 0x145   : > { %2004 = vmatpush3.bf16.xpose.msra.mxu0 %v470_v16  ;;  %v1612_v16 = vld [vmem:[%s2699_s26 + $0x4a0] sm:$0xff] }
 0x146   : > { %2024 = vmatpush3.bf16.xpose.msra.mxu1 %v478_v17  ;;  %2005 = vmatprep.subr.bf16.mxu0 %v2502_v11  ;;  %v1613_v17 = vld [vmem:[%s2699_s26 + $0x4a8] sm:$0xff] }
 0x147   : > { %2025 = vmatprep.subr.bf16.mxu1 %v2502_v11  ;;  %v623_v19 = vpack.c.bf16 %v1613_v17, %v1612_v16  ;;  %v1649_v16 = vld [vmem:[%s2699_s26 + $0x5c8] sm:$0xff]  ;;  %v632_v17 = vpack.c.bf16 %v1631_v14, %v1630_v13  ;;  %v1683_v13 = vld [vmem:[%s2699_s26 + $0x6d8] sm:$0xff]  ;;  %v1664_v14 = vld [vmem:[%s2699_s26 + $0x640] sm:$0xff] }
 0x14d   : > { %2006 = vmatpush3.bf16.xpose.msra.mxu0 %v469_v22  ;;  %v1610_v22 = vld [vmem:[%s2699_s26 + $0x490] sm:$0xff] }
 0x14e   : > { %2026 = vmatpush3.bf16.xpose.msra.mxu1 %v477_v23  ;;  %2007 = vmatprep.subr.bf16.mxu0 %v2502_v11  ;;  %v1611_v23 = vld [vmem:[%s2699_s26 + $0x498] sm:$0xff] }
 0x14f   : > { %2027 = vmatprep.subr.bf16.mxu1 %v2502_v11  ;;  %v622_v25 = vpack.c.bf16 %v1611_v23, %v1610_v22  ;;  %v1647_v22 = vld [vmem:[%s2699_s26 + $0x5b8] sm:$0xff] }
 0x155   : > { %2008 = vmatpush3.bf16.xpose.msra.mxu0 %v468_v28  ;;  %v621_v28 = vpack.c.bf16 %v1609_v27, %v1608_v26  ;;  %v1627_v26 = vld [vmem:[%s2699_s26 + $0x518] sm:$0xff]  ;;  %v1644_v27 = vld [vmem:[%s2699_s26 + $0x5a0] sm:$0xff] }
 0x156   : > { %2028 = vmatpush3.bf16.xpose.msra.mxu1 %v476_v30  ;;  %2033 = vmatprep.subr.bf16.mxu0 %v2502_v11 }
 0x157   : > { %2053 = vmatprep.subr.bf16.mxu1 %v2502_v11 }
 0x15c   : > { %v2920_v39 = vpop.f32.mrf.mxu0  ;;  %2010 = vmatmul.mubr.bf16.vlgmr.msra.gmra.mxu0 %v290_v34 }
 0x15d   : > { %v2922_v40 = vpop.f32.mrf.mxu1  ;;  %2030 = vmatmul.mubr.bf16.vlgmr.msra.gmra.mxu1 %v291_v35  ;;  %997 = vmax.xlane.f32.xlu0 %v2920_v39 }
 0x15e   : > { %v1891_v41 = vpop.f32.mrf.mxu0  ;;  %2034 = vmatpush3.bf16.msra.mxu0 %v620_v38  ;;  %2049 = vmatprep.mubr.msk.bf16.mxu0 %vm2503_vm0, %v2502_v11 }
 0x15f   : > { %v1911_v45 = vpop.f32.mrf.mxu1  ;;  %2035 = vmatprep.subr.bf16.mxu0 %v2502_v11  ;;  %2069 = vmatprep.mubr.msk.bf16.mxu1 %vm2503_vm0, %v2502_v11 }
 0x160   : > { %v714_v48 = vpop.f32.mrf.mxu0  ;;  %2054 = vmatpush3.bf16.msra.mxu1 %v628_v49 }
 0x161   : > { %v754_v50 = vpop.f32.mrf.mxu1  ;;  %999 = vmax.xlane.f32.xlu0 %v2922_v40  ;;  %2055 = vmatprep.subr.bf16.mxu1 %v2502_v11 }
 0x162   : > { %v1892_v51 = vpop.f32.mrf.mxu0  ;;  %2036 = vmatpush3.bf16.msra.mxu0 %v619_v46 }
 0x163   : > { %v1912_v55 = vpop.f32.mrf.mxu1  ;;  %2037 = vmatprep.subr.bf16.mxu0 %v2502_v11 }
 0x164   : > { %2056 = vmatpush3.bf16.msra.mxu1 %v627_v58  ;;  %v1637_v58 = vld [vmem:[%s2699_s26 + $0x568] sm:$0xff] }
 0x165   : > { %2057 = vmatprep.subr.bf16.mxu1 %v2502_v11  ;;  %v635_v61 = vpack.c.bf16 %v1637_v58, %v1636_v57 }
 0x166   : > { %2038 = vmatpush3.bf16.msra.mxu0 %v618_v56  ;;  %v636_v56 = vpack.c.bf16 %v1639_v54, %v1638_v53 }
 0x167   : > { %2039 = vmatprep.subr.bf16.mxu0 %v2502_v11 }
 0x168   : > { %2058 = vmatpush3.bf16.msra.mxu1 %v626_v0 }
 0x169   : > { %2059 = vmatprep.subr.bf16.mxu1 %v2502_v11 }
 0x16a   : > { %2040 = vmatpush3.bf16.msra.mxu0 %v617_v62  ;;  %v644_v62 = vpack.c.bf16 %v1655_v60, %v1654_v59  ;;  %v1671_v60 = vld [vmem:[%s2699_s26 + $0x678] sm:$0xff] }
 0x16b   : > { %2041 = vmatprep.subr.bf16.mxu0 %v2502_v11 }
 0x16c   : > { %2060 = vmatpush3.bf16.msra.mxu1 %v625_v6  ;;  %v1632_v6 = vld [vmem:[%s2699_s26 + $0x540] sm:$0xff] }
 0x16d   : > { %2061 = vmatprep.subr.bf16.mxu1 %v2502_v11 }
 0x16e   : > { %2042 = vmatpush3.bf16.msra.mxu0 %v616_v4  ;;  %v634_v4 = vpack.c.bf16 %v1635_v1, %v1634_v63  ;;  %v1669_v1 = vld [vmem:[%s2699_s26 + $0x668] sm:$0xff] }
 0x16f   : > { %2043 = vmatprep.subr.bf16.mxu0 %v2502_v11 }
 0x170   : > { %2062 = vmatpush3.bf16.msra.mxu1 %v624_v15  ;;  %v1648_v15 = vld [vmem:[%s2699_s26 + $0x5c0] sm:$0xff] }
 0x171   : > { %2063 = vmatprep.subr.bf16.mxu1 %v2502_v11 }
 0x172   : > { %2044 = vmatpush3.bf16.msra.mxu0 %v615_v10  ;;  %v633_v10 = vpack.c.bf16 %v1633_v7, %v1632_v6  ;;  %v1685_v6 = vld [vmem:[%s2699_s26 + $0x6e8] sm:$0xff]  ;;  %v1666_v7 = vld [vmem:[%s2699_s26 + $0x650] sm:$0xff] }
 0x173   : > { %2045 = vmatprep.subr.bf16.mxu0 %v2502_v11 }
 0x174   : > { %2064 = vmatpush3.bf16.msra.mxu1 %v623_v19  ;;  %v1628_v19 = vld [vmem:[%s2699_s26 + $0x520] sm:$0xff] }
 0x175   : > { %2065 = vmatprep.subr.bf16.mxu1 %v2502_v11  ;;  %v631_v23 = vpack.c.bf16 %v1629_v20, %v1628_v19  ;;  %v1681_v19 = vld [vmem:[%s2699_s26 + $0x6c8] sm:$0xff]  ;;  %v1662_v20 = vld [vmem:[%s2699_s26 + $0x630] sm:$0xff] }
 0x176   : > { %2046 = vmatpush3.bf16.msra.mxu0 %v614_v18  ;;  %v641_v18 = vpack.c.bf16 %v1649_v16, %v1648_v15  ;;  %v1665_v15 = vld [vmem:[%s2699_s26 + $0x648] sm:$0xff] }
 0x177   : > { %2047 = vmatprep.subr.bf16.mxu0 %v2502_v11 }
 0x178   : > { %2066 = vmatpush3.bf16.msra.mxu1 %v622_v25  ;;  %v1626_v25 = vld [vmem:[%s2699_s26 + $0x510] sm:$0xff] }
 0x179   : > { %2067 = vmatprep.subr.bf16.mxu1 %v2502_v11 }
 0x17a   : > { %2048 = vmatpush3.bf16.msra.mxu0 %v613_v24  ;;  %v640_v24 = vpack.c.bf16 %v1647_v22, %v1646_v21  ;;  %v1663_v21 = vld [vmem:[%s2699_s26 + $0x638] sm:$0xff] }
 0x17b   : > { %2073 = vmatprep.subr.bf16.mxu0 %v2502_v11 }
 0x17c   : > { %2068 = vmatpush3.bf16.msra.mxu1 %v621_v28  ;;  %v1645_v28 = vld [vmem:[%s2699_s26 + $0x5a8] sm:$0xff] }
 0x17d   : > { %2093 = vmatprep.subr.bf16.mxu1 %v2502_v11 }
 0x19c   : > { %v2976_v29 = vpop.f32.mrf.mxu0 }
 0x19d   : > { %v2978_v30 = vpop.f32.mrf.mxu1  ;;  %1001 = vmax.xlane.f32.xlu1 %v2976_v29 }
 0x19e   : > { %v1931_v31 = vpop.f32.mrf.mxu0 }
 0x19f   : > { %v1951_v32 = vpop.f32.mrf.mxu1  ;;  %v630_v31 = vpack.c.bf16 %v1627_v26, %v1626_v25  ;;  %v1679_v25 = vld [vmem:[%s2699_s26 + $0x6b8] sm:$0xff]  ;;  %v1660_v26 = vld [vmem:[%s2699_s26 + $0x620] sm:$0xff] }
 0x1a0   : > { %v794_v33 = vpop.f32.mrf.mxu0  ;;  %v639_v32 = vpack.c.bf16 %v1645_v28, %v1644_v27  ;;  %v1661_v27 = vld [vmem:[%s2699_s26 + $0x628] sm:$0xff] }
 0x1a1   : > { %v834_v34 = vpop.f32.mrf.mxu1  ;;  %1003 = vmax.xlane.f32.xlu1 %v2978_v30  ;;  %v1624_v33 = vld [vmem:[%s2699_s26 + $0x500] sm:$0xff] }
 0x1a2   : > { %v1932_v35 = vpop.f32.mrf.mxu0  ;;  %v1625_v34 = vld [vmem:[%s2699_s26 + $0x508] sm:$0xff] }
 0x1a3   : > { %v1952_v36 = vpop.f32.mrf.mxu1  ;;  %v1642_v35 = vld [vmem:[%s2699_s26 + $0x590] sm:$0xff] }
 0x1a4   : > { %v1643_v36 = vld [vmem:[%s2699_s26 + $0x598] sm:$0xff] }
 0x1dc   : > { %v2982_v37 = vpop.f32.mrf.mxu0 }
 0x1dd   : > { %v2984_v38 = vpop.f32.mrf.mxu1  ;;  %1005 = vmax.xlane.f32.xlu0 %v2982_v37 }
 0x1de   : > { %1007 = vmax.xlane.f32.xlu1 %v2984_v38  ;;  %v1971_v41 = vpop.f32.mrf.mxu0 }
 0x1df   : > { %v1991_v42 = vpop.f32.mrf.mxu1  ;;  %v629_v41 = vpack.c.bf16 %v1625_v34, %v1624_v33  ;;  %v1677_v33 = vld [vmem:[%s2699_s26 + $0x6a8] sm:$0xff]  ;;  %v1658_v34 = vld [vmem:[%s2699_s26 + $0x610] sm:$0xff] }
 0x1e0   : > { %v874_v43 = vpop.f32.mrf.mxu0  ;;  %v638_v42 = vpack.c.bf16 %v1643_v36, %v1642_v35  ;;  %v1659_v35 = vld [vmem:[%s2699_s26 + $0x618] sm:$0xff] }
 0x1e1   : > { %v914_v44 = vpop.f32.mrf.mxu1  ;;  %v1640_v43 = vld [vmem:[%s2699_s26 + $0x580] sm:$0xff] }
 0x1e2   : > { %v1972_v45 = vpop.f32.mrf.mxu0  ;;  %v1641_v44 = vld [vmem:[%s2699_s26 + $0x588] sm:$0xff] }
 0x1e3   : > { %v1992_v46 = vpop.f32.mrf.mxu1  ;;  %v637_v45 = vpack.c.bf16 %v1641_v44, %v1640_v43  ;;  %v1675_v43 = vld [vmem:[%s2699_s26 + $0x698] sm:$0xff]  ;;  %v1656_v44 = vld [vmem:[%s2699_s26 + $0x600] sm:$0xff] }
 0x1e6   : > { %v998_v47 = vpop.xlane.xlu0 %997 }
 0x1e7   : > { %v1013_v48 = vsub.f32 %v2920_v39, %v998_v47 }
 0x1e9   : > { %v1021_v49 = vmul.f32 1.442695, %v1013_v48 }
 0x1ea   : > { %v1000_v50 = vpop.xlane.xlu0 %999 }
 0x1eb   : > { %2310 = vpow2.f32 %v1021_v49  ;;  %v1014_v51 = vsub.f32 %v2922_v40, %v1000_v50 }
 0x1ed   : > { %v1023_v52 = vmul.f32 1.442695, %v1014_v51 }
 0x1ef   : > { %2312 = vpow2.f32 %v1023_v52 }
 0x1f8   : > { %v2992_v55 = vpop.eup %2310 }
 0x1f9   : > { %v1085_v39 = vpack.c.bf16 %v2992_v55, %v2992_v55 }
 0x1fb   : > { %2050 = vmatmul.mubr.bf16.vlgmr.msra.gmra.mxu0 %v1085_v39 }
 0x1fc   : > { %v3000_v40 = vpop.eup %2312  ;;  %2074 = vmatpush3.bf16.msra.mxu0 %v636_v56  ;;  %2089 = vmatprep.mubr.msk.bf16.mxu0 %vm2503_vm0, %v2502_v11 }
 0x1fd   : > { %v1086_v0 = vpack.c.bf16 %v3000_v40, %v3000_v40  ;;  %2075 = vmatprep.subr.bf16.mxu0 %v2502_v11 }
 0x1ff   : > { %2070 = vmatmul.mubr.bf16.vlgmr.msra.gmra.mxu1 %v1086_v0  ;;  %v1668_v0 = vld [vmem:[%s2699_s26 + $0x660] sm:$0xff] }
 0x200   : > { %2076 = vmatpush3.bf16.msra.mxu0 %v635_v61  ;;  %2094 = vmatpush3.bf16.msra.mxu1 %v644_v62  ;;  %v1686_v62 = vld [vmem:[%s2699_s26 + $0x6f0] sm:$0xff]  ;;  %v651_v3 = vpack.c.bf16 %v1669_v1, %v1668_v0  ;;  %v1701_v0 = vld [vmem:[%s2699_s26 + $0x768] sm:$0xff] }
 0x201   : > { %2077 = vmatprep.subr.bf16.mxu0 %v2502_v11  ;;  %2095 = vmatprep.subr.bf16.mxu1 %v2502_v11 }
 0x202   : > { %2109 = vmatprep.mubr.msk.bf16.mxu1 %vm2503_vm0, %v2502_v11 }
 0x204   : > { %2078 = vmatpush3.bf16.msra.mxu0 %v634_v4  ;;  %2096 = vmatpush3.bf16.msra.mxu1 %v643_v5  ;;  %v1684_v4 = vld [vmem:[%s2699_s26 + $0x6e0] sm:$0xff] }
 0x205   : > { %2079 = vmatprep.subr.bf16.mxu0 %v2502_v11  ;;  %2097 = vmatprep.subr.bf16.mxu1 %v2502_v11  ;;  %v659_v9 = vpack.c.bf16 %v1685_v6, %v1684_v4  ;;  %v1699_v6 = vld [vmem:[%s2699_s26 + $0x758] sm:$0xff] }
 0x208   : > { %2080 = vmatpush3.bf16.msra.mxu0 %v633_v10  ;;  %2098 = vmatpush3.bf16.msra.mxu1 %v642_v12  ;;  %v650_v10 = vpack.c.bf16 %v1667_v8, %v1666_v7  ;;  %v1682_v12 = vld [vmem:[%s2699_s26 + $0x6d0] sm:$0xff]  ;;  %v1715_v8 = vld [vmem:[%s2699_s26 + $0x7d8] sm:$0xff] }
 0x209   : > { %2081 = vmatprep.subr.bf16.mxu0 %v2502_v11  ;;  %2099 = vmatprep.subr.bf16.mxu1 %v2502_v11  ;;  %v658_v16 = vpack.c.bf16 %v1683_v13, %v1682_v12  ;;  %v1714_v7 = vld [vmem:[%s2699_s26 + $0x7d0] sm:$0xff]  ;;  %v1696_v12 = vld [vmem:[%s2699_s26 + $0x740] sm:$0xff]  ;;  %v1697_v13 = vld [vmem:[%s2699_s26 + $0x748] sm:$0xff] }
 0x20c   : > { %2082 = vmatpush3.bf16.msra.mxu0 %v632_v17  ;;  %2100 = vmatpush3.bf16.msra.mxu1 %v641_v18  ;;  %v649_v17 = vpack.c.bf16 %v1665_v15, %v1664_v14  ;;  %v1680_v18 = vld [vmem:[%s2699_s26 + $0x6c0] sm:$0xff]  ;;  %v1713_v15 = vld [vmem:[%s2699_s26 + $0x7c8] sm:$0xff] }
 0x20d   : > { %2083 = vmatprep.subr.bf16.mxu0 %v2502_v11  ;;  %2101 = vmatprep.subr.bf16.mxu1 %v2502_v11  ;;  %v657_v22 = vpack.c.bf16 %v1681_v19, %v1680_v18  ;;  %v1712_v14 = vld [vmem:[%s2699_s26 + $0x7c0] sm:$0xff]  ;;  %v1694_v18 = vld [vmem:[%s2699_s26 + $0x730] sm:$0xff]  ;;  %v1695_v19 = vld [vmem:[%s2699_s26 + $0x738] sm:$0xff] }
 0x210   : > { %2084 = vmatpush3.bf16.msra.mxu0 %v631_v23  ;;  %2102 = vmatpush3.bf16.msra.mxu1 %v640_v24  ;;  %v648_v23 = vpack.c.bf16 %v1663_v21, %v1662_v20  ;;  %v1678_v24 = vld [vmem:[%s2699_s26 + $0x6b0] sm:$0xff]  ;;  %v1711_v21 = vld [vmem:[%s2699_s26 + $0x7b8] sm:$0xff] }
 0x211   : > { %2085 = vmatprep.subr.bf16.mxu0 %v2502_v11  ;;  %2103 = vmatprep.subr.bf16.mxu1 %v2502_v11  ;;  %v656_v28 = vpack.c.bf16 %v1679_v25, %v1678_v24  ;;  %v1710_v20 = vld [vmem:[%s2699_s26 + $0x7b0] sm:$0xff]  ;;  %v1692_v24 = vld [vmem:[%s2699_s26 + $0x720] sm:$0xff]  ;;  %v1693_v25 = vld [vmem:[%s2699_s26 + $0x728] sm:$0xff] }
 0x214   : > { %2086 = vmatpush3.bf16.msra.mxu0 %v630_v31  ;;  %2104 = vmatpush3.bf16.msra.mxu1 %v639_v32  ;;  %v647_v31 = vpack.c.bf16 %v1661_v27, %v1660_v26  ;;  %v1676_v32 = vld [vmem:[%s2699_s26 + $0x6a0] sm:$0xff]  ;;  %v1709_v27 = vld [vmem:[%s2699_s26 + $0x7a8] sm:$0xff] }
 0x215   : > { %2087 = vmatprep.subr.bf16.mxu0 %v2502_v11  ;;  %2105 = vmatprep.subr.bf16.mxu1 %v2502_v11  ;;  %v655_v36 = vpack.c.bf16 %v1677_v33, %v1676_v32  ;;  %v1708_v26 = vld [vmem:[%s2699_s26 + $0x7a0] sm:$0xff]  ;;  %v1690_v32 = vld [vmem:[%s2699_s26 + $0x710] sm:$0xff]  ;;  %v1691_v33 = vld [vmem:[%s2699_s26 + $0x718] sm:$0xff] }
 0x218   : > { %2088 = vmatpush3.bf16.msra.mxu0 %v629_v41  ;;  %2106 = vmatpush3.bf16.msra.mxu1 %v638_v42  ;;  %v646_v41 = vpack.c.bf16 %v1659_v35, %v1658_v34  ;;  %v1674_v42 = vld [vmem:[%s2699_s26 + $0x690] sm:$0xff]  ;;  %v1707_v35 = vld [vmem:[%s2699_s26 + $0x798] sm:$0xff] }
 0x219   : > { %2107 = vmatprep.subr.bf16.mxu1 %v2502_v11  ;;  %2113 = vmatprep.subr.bf16.mxu0 %v2502_v11  ;;  %v1706_v34 = vld [vmem:[%s2699_s26 + $0x790] sm:$0xff] }
 0x21c   : > { %v3049_v46 = vpop.f32.mrf.mxu0  ;;  %2108 = vmatpush3.bf16.msra.mxu1 %v637_v45  ;;  %v1657_v45 = vld [vmem:[%s2699_s26 + $0x608] sm:$0xff] }
 0x21d   : > { %v3051_v47 = vpop.f32.mrf.mxu1  ;;  %1009 = vmax.xlane.f32.xlu0 %v3049_v46  ;;  %2133 = vmatprep.subr.bf16.mxu1 %v2502_v11 }
 0x21e   : > { %1011 = vmax.xlane.f32.xlu1 %v3051_v47  ;;  %v2011_v48 = vpop.f32.mrf.mxu0 }
 0x21f   : > { %v2031_v49 = vpop.f32.mrf.mxu1  ;;  %v654_v48 = vpack.c.bf16 %v1675_v43, %v1674_v42  ;;  %v1688_v42 = vld [vmem:[%s2699_s26 + $0x700] sm:$0xff]  ;;  %v1689_v43 = vld [vmem:[%s2699_s26 + $0x708] sm:$0xff] }
 0x220   : > { %v954_v50 = vpop.f32.mrf.mxu0  ;;  %v645_v49 = vpack.c.bf16 %v1657_v45, %v1656_v44  ;;  %v1704_v44 = vld [vmem:[%s2699_s26 + $0x780] sm:$0xff]  ;;  %v1705_v45 = vld [vmem:[%s2699_s26 + $0x788] sm:$0xff] }
 0x221   : > { %v994_v51 = vpop.f32.mrf.mxu1  ;;  %1037 = vadd.xlane.f32.xlu0 %v2992_v55  ;;  %v1670_v55 = vld [vmem:[%s2699_s26 + $0x670] sm:$0xff]  ;;  %v1672_v50 = vld [vmem:[%s2699_s26 + $0x680] sm:$0xff] }
 0x222   : > { %1039 = vadd.xlane.f32.xlu1 %v3000_v40  ;;  %v2012_v52 = vpop.f32.mrf.mxu0  ;;  %v652_v40 = vpack.c.bf16 %v1671_v60, %v1670_v55  ;;  %v1673_v51 = vld [vmem:[%s2699_s26 + $0x688] sm:$0xff]  ;;  %v1703_v55 = vld [vmem:[%s2699_s26 + $0x778] sm:$0xff]  ;;  %v1718_v60 = vld [vmem:[%s2699_s26 + $0x7f0] sm:$0xff] }
 0x223   : > { %v2032_v53 = vpop.f32.mrf.mxu1  ;;  %v653_v52 = vpack.c.bf16 %v1673_v51, %v1672_v50 }
 0x226   : > { %v1002_v54 = vpop.xlane.xlu1 %1001 }
 0x227   : > { %v1015_v56 = vsub.f32 %v2976_v29, %v1002_v54  ;;  %v1687_v29 = vld [vmem:[%s2699_s26 + $0x6f8] sm:$0xff] }
 0x229   : > { %v1025_v57 = vmul.f32 1.442695, %v1015_v56 }
 0x22a   : > { %v1004_v39 = vpop.xlane.xlu1 %1003 }
 0x22b   : > { %2314 = vpow2.f32 %v1025_v57  ;;  %v1016_v58 = vsub.f32 %v2978_v30, %v1004_v39  ;;  %v660_v30 = vpack.c.bf16 %v1687_v29, %v1686_v62 }
 0x22d   : > { %v1027_v59 = vmul.f32 1.442695, %v1016_v58 }
 0x22f   : > { %2316 = vpow2.f32 %v1027_v59  ;;  %v1702_v59 = vld [vmem:[%s2699_s26 + $0x770] sm:$0xff] }
 0x230   : > { %v668_v62 = vpack.c.bf16 %v1703_v55, %v1702_v59 }
 0x238   : > { %v2315_v61 = vpop.eup %2314 }
 0x239   : > { %1041 = vadd.xlane.f32.xlu0 %v2315_v61  ;;  %v1087_v63 = vpack.c.bf16 %v2315_v61, %v2315_v61  ;;  %v1719_v61 = vld [vmem:[%s2699_s26 + $0x7f8] sm:$0xff] }
 0x23a   : > { %v676_v29 = vpack.c.bf16 %v1719_v61, %v1718_v60 }
 0x23b   : > { %2090 = vmatmul.mubr.bf16.vlgmr.msra.gmra.mxu0 %v1087_v63 }
 0x23c   : > { %v2317_v2 = vpop.eup %2316  ;;  %2114 = vmatpush3.bf16.msra.mxu0 %v652_v40  ;;  %2129 = vmatprep.mubr.msk.bf16.mxu0 %vm2503_vm0, %v2502_v11 }
 0x23d   : > { %1043 = vadd.xlane.f32.xlu1 %v2317_v2  ;;  %v1088_v5 = vpack.c.bf16 %v2317_v2, %v2317_v2  ;;  %2115 = vmatprep.subr.bf16.mxu0 %v2502_v11  ;;  %v1716_v2 = vld [vmem:[%s2699_s26 + $0x7e0] sm:$0xff] }
 0x23f   : > { %2110 = vmatmul.mubr.bf16.vlgmr.msra.gmra.mxu1 %v1088_v5  ;;  %v1698_v5 = vld [vmem:[%s2699_s26 + $0x750] sm:$0xff] }
 0x240   : > { %2134 = vmatpush3.bf16.msra.mxu1 %v660_v30  ;;  %2116 = vmatpush3.bf16.msra.mxu0 %v651_v3  ;;  %v1717_v30 = vld [vmem:[%s2699_s26 + $0x7e8] sm:$0xff] }
 0x241   : > { %2135 = vmatprep.subr.bf16.mxu1 %v2502_v11  ;;  %2117 = vmatprep.subr.bf16.mxu0 %v2502_v11  ;;  %v675_v4 = vpack.c.bf16 %v1717_v30, %v1716_v2 }
 0x242   : > { %2149 = vmatprep.mubr.msk.bf16.mxu1 %vm2503_vm0, %v2502_v11 }
 0x244   : > { %2136 = vmatpush3.bf16.msra.mxu1 %v659_v9  ;;  %2118 = vmatpush3.bf16.msra.mxu0 %v650_v10  ;;  %v666_v9 = vpack.c.bf16 %v1699_v6, %v1698_v5  ;;  %v674_v10 = vpack.c.bf16 %v1715_v8, %v1714_v7 }
 0x245   : > { %2137 = vmatprep.subr.bf16.mxu1 %v2502_v11  ;;  %2119 = vmatprep.subr.bf16.mxu0 %v2502_v11 }
 0x248   : > { %2138 = vmatpush3.bf16.msra.mxu1 %v658_v16  ;;  %2120 = vmatpush3.bf16.msra.mxu0 %v649_v17  ;;  %v665_v16 = vpack.c.bf16 %v1697_v13, %v1696_v12  ;;  %v673_v17 = vpack.c.bf16 %v1713_v15, %v1712_v14 }
 0x249   : > { %2139 = vmatprep.subr.bf16.mxu1 %v2502_v11  ;;  %2121 = vmatprep.subr.bf16.mxu0 %v2502_v11 }
 0x24c   : > { %2140 = vmatpush3.bf16.msra.mxu1 %v657_v22  ;;  %2122 = vmatpush3.bf16.msra.mxu0 %v648_v23  ;;  %v664_v22 = vpack.c.bf16 %v1695_v19, %v1694_v18  ;;  %v672_v23 = vpack.c.bf16 %v1711_v21, %v1710_v20 }
 0x24d   : > { %2141 = vmatprep.subr.bf16.mxu1 %v2502_v11  ;;  %2123 = vmatprep.subr.bf16.mxu0 %v2502_v11 }
 0x250   : > { %2142 = vmatpush3.bf16.msra.mxu1 %v656_v28  ;;  %2124 = vmatpush3.bf16.msra.mxu0 %v647_v31  ;;  %v663_v28 = vpack.c.bf16 %v1693_v25, %v1692_v24  ;;  %v671_v31 = vpack.c.bf16 %v1709_v27, %v1708_v26 }
 0x251   : > { %2143 = vmatprep.subr.bf16.mxu1 %v2502_v11  ;;  %2125 = vmatprep.subr.bf16.mxu0 %v2502_v11 }
 0x254   : > { %2144 = vmatpush3.bf16.msra.mxu1 %v655_v36  ;;  %2126 = vmatpush3.bf16.msra.mxu0 %v646_v41  ;;  %v662_v36 = vpack.c.bf16 %v1691_v33, %v1690_v32  ;;  %v670_v41 = vpack.c.bf16 %v1707_v35, %v1706_v34 }
 0x255   : > { %2145 = vmatprep.subr.bf16.mxu1 %v2502_v11  ;;  %2127 = vmatprep.subr.bf16.mxu0 %v2502_v11 }
 0x258   : > { %2146 = vmatpush3.bf16.msra.mxu1 %v654_v48  ;;  %2128 = vmatpush3.bf16.msra.mxu0 %v645_v49  ;;  %v661_v48 = vpack.c.bf16 %v1689_v43, %v1688_v42  ;;  %v669_v49 = vpack.c.bf16 %v1705_v45, %v1704_v44 }
 0x259   : > { %2147 = vmatprep.subr.bf16.mxu1 %v2502_v11  ;;  %2153 = vmatprep.subr.bf16.mxu0 %v2502_v11 }
 0x25c   : > { %2148 = vmatpush3.bf16.msra.mxu1 %v653_v52 }
 0x25d   : > { %2173 = vmatprep.subr.bf16.mxu1 %v2502_v11 }
 0x266   : > { %v1006_v53 = vpop.xlane.xlu0 %1005 }
 0x267   : > { %v1008_v54 = vpop.xlane.xlu1 %1007  ;;  %v1017_v56 = vsub.f32 %v2982_v37, %v1006_v53 }
 0x268   : > { %v1018_v57 = vsub.f32 %v2984_v38, %v1008_v54  ;;  %v1700_v38 = vld [vmem:[%s2699_s26 + $0x760] sm:$0xff] }
 0x269   : > { %v1029_v39 = vmul.f32 1.442695, %v1017_v56  ;;  %v667_v3 = vpack.c.bf16 %v1701_v0, %v1700_v38 }
 0x26a   : > { %v1031_v58 = vmul.f32 1.442695, %v1018_v57 }
 0x26b   : > { %2318 = vpow2.f32 %v1029_v39 }
 0x26c   : > { %2320 = vpow2.f32 %v1031_v58 }
 0x278   : > { %v2319_v40 = vpop.eup %2318 }
 0x279   : > { %v2321_v63 = vpop.eup %2320  ;;  %1045 = vadd.xlane.f32.xlu0 %v2319_v40  ;;  %v1089_v37 = vpack.c.bf16 %v2319_v40, %v2319_v40 }
 0x27a   : > { %1047 = vadd.xlane.f32.xlu1 %v2321_v63  ;;  %v1090_v1 = vpack.c.bf16 %v2321_v63, %v2321_v63 }
 0x27b   : > { %2130 = vmatmul.mubr.bf16.vlgmr.msra.gmra.mxu0 %v1089_v37 }
 0x27c   : > { %2150 = vmatmul.mubr.bf16.vlgmr.msra.gmra.mxu1 %v1090_v1  ;;  %2154 = vmatpush3.bf16.msra.mxu0 %v668_v62 }
 0x27d   : > { %2174 = vmatpush3.bf16.msra.mxu1 %v676_v29  ;;  %2155 = vmatprep.subr.bf16.mxu0 %v2502_v11 }
 0x27e   : > { %2175 = vmatprep.subr.bf16.mxu1 %v2502_v11  ;;  %2169 = vmatprep.mubr.msk.bf16.mxu0 %vm2503_vm0, %v2502_v11 }
 0x27f   : > { %2189 = vmatprep.mubr.msk.bf16.mxu1 %vm2503_vm0, %v2502_v11 }
 0x280   : > { %2156 = vmatpush3.bf16.msra.mxu0 %v667_v3 }
 0x281   : > { %2176 = vmatpush3.bf16.msra.mxu1 %v675_v4  ;;  %2157 = vmatprep.subr.bf16.mxu0 %v2502_v11 }
 0x282   : > { %2177 = vmatprep.subr.bf16.mxu1 %v2502_v11 }
 0x284   : > { %2158 = vmatpush3.bf16.msra.mxu0 %v666_v9 }
 0x285   : > { %2178 = vmatpush3.bf16.msra.mxu1 %v674_v10  ;;  %2159 = vmatprep.subr.bf16.mxu0 %v2502_v11 }
 0x286   : > { %2179 = vmatprep.subr.bf16.mxu1 %v2502_v11 }
 0x288   : > { %2160 = vmatpush3.bf16.msra.mxu0 %v665_v16 }
 0x289   : > { %2180 = vmatpush3.bf16.msra.mxu1 %v673_v17  ;;  %2161 = vmatprep.subr.bf16.mxu0 %v2502_v11 }
 0x28a   : > { %2181 = vmatprep.subr.bf16.mxu1 %v2502_v11 }
 0x28c   : > { %2162 = vmatpush3.bf16.msra.mxu0 %v664_v22 }
 0x28d   : > { %2182 = vmatpush3.bf16.msra.mxu1 %v672_v23  ;;  %2163 = vmatprep.subr.bf16.mxu0 %v2502_v11 }
 0x28e   : > { %2183 = vmatprep.subr.bf16.mxu1 %v2502_v11 }
 0x290   : > { %2164 = vmatpush3.bf16.msra.mxu0 %v663_v28 }
 0x291   : > { %2184 = vmatpush3.bf16.msra.mxu1 %v671_v31  ;;  %2165 = vmatprep.subr.bf16.mxu0 %v2502_v11 }
 0x292   : > { %2185 = vmatprep.subr.bf16.mxu1 %v2502_v11 }
 0x294   : > { %2166 = vmatpush3.bf16.msra.mxu0 %v662_v36 }
 0x295   : > { %2186 = vmatpush3.bf16.msra.mxu1 %v670_v41  ;;  %2167 = vmatprep.subr.bf16.mxu0 %v2502_v11 }
 0x296   : > { %2187 = vmatprep.subr.bf16.mxu1 %v2502_v11 }
 0x298   : > { %2168 = vmatpush3.bf16.msra.mxu0 %v661_v48 }
 0x299   : > { %2188 = vmatpush3.bf16.msra.mxu1 %v669_v49 }
 0x2a6   : > { %v1010_v50 = vpop.xlane.xlu0 %1009 }
 0x2a7   : > { %v1012_v51 = vpop.xlane.xlu1 %1011  ;;  %v1019_v52 = vsub.f32 %v3049_v46, %v1010_v50 }
 0x2a8   : > { %v1020_v53 = vsub.f32 %v3051_v47, %v1012_v51 }
 0x2a9   : > { %v1033_v54 = vmul.f32 1.442695, %v1019_v52 }
 0x2aa   : > { %v1035_v56 = vmul.f32 1.442695, %v1020_v53  ;;  %v1038_v39 = vpop.xlane.xlu0 %1037 }
 0x2ab   : > { %2322 = vpow2.f32 %v1033_v54  ;;  %v1040_v57 = vpop.xlane.xlu1 %1039 }
 0x2ac   : > { %2324 = vpow2.f32 %v1035_v56 }
 0x2ad   : > { %2326 = vrcp.f32 %v1040_v57 }
 0x2ae   : > { %2328 = vrcp.f32 %v1038_v39 }
 0x2b8   : > { %v2323_v58 = vpop.eup %2322 }
 0x2b9   : > { %v2325_v59 = vpop.eup %2324  ;;  %1049 = vadd.xlane.f32.xlu0 %v2323_v58  ;;  %v1091_v11 = vpack.c.bf16 %v2323_v58, %v2323_v58 }
 0x2ba   : > { %v2327_v55 = vpop.eup %2326  ;;  %1051 = vadd.xlane.f32.xlu1 %v2325_v59  ;;  %v1092_v60 = vpack.c.bf16 %v2325_v59, %v2325_v59 }
 0x2bb   : > { %v2329_v61 = vpop.eup %2328  ;;  %v1062_v40 = vmul.f32 %v2327_v55, %v1040_v57  ;;  %v1127_v46 = vpop.f32.mrf.mxu0  ;;  %2170 = vmatmul.mubr.bf16.vlgmr.msra.gmra.mxu0 %v1091_v11 }
 0x2bc   : > { %v1061_v47 = vmul.f32 %v2329_v61, %v1038_v39  ;;  %2190 = vmatmul.mubr.bf16.vlgmr.msra.gmra.mxu1 %v1092_v60 }
 0x2bd   : > { %v1070_v62 = vsub.f32 2.0, %v1062_v40  ;;  %v2051_v63 = vpop.f32.mrf.mxu0 }
 0x2be   : > { %v1069_v37 = vsub.f32 2.0, %v1061_v47 }
 0x2bf   : > { %v1130_v29 = vpop.f32.mrf.mxu0  ;;  %v1078_v38 = vmul.f32 %v2327_v55, %v1070_v62  ;;  %v1167_v0 = vpop.f32.mrf.mxu1 }
 0x2c0   : > { %v1077_v1 = vmul.f32 %v2329_v61, %v1069_v37 }
 0x2c1   : > { %v1414_v2 = vmul.f32 %v1167_v0, %v1078_v38  ;;  %v2052_v30 = vpop.f32.mrf.mxu0  ;;  %v2071_v3 = vpop.f32.mrf.mxu1 }
 0x2c2   : > { %v1413_v4 = vmul.f32 %v1127_v46, %v1077_v1  ;;  %v1042_v7 = vpop.xlane.xlu0 %1041 }
 0x2c3   : > { %1422 = vst [vmem:[#allocation2] sm:$0xff] %v1414_v2  ;;  %v1170_v5 = vpop.f32.mrf.mxu1  ;;  %2330 = vrcp.f32 %v1042_v7 }
 0x2c4   : > { %1421 = vst [vmem:[#allocation2 + $0x30] sm:$0xff] %v1413_v4 }
 0x2c5   : > { %v2072_v6 = vpop.f32.mrf.mxu1 }
 0x2c6   : > { %v1044_v8 = vpop.xlane.xlu1 %1043 }
 0x2c7   : > { %2332 = vrcp.f32 %v1044_v8 }
 0x2d0   : > { %v2331_v9 = vpop.eup %2330 }
 0x2d1   : > { %v1063_v10 = vmul.f32 %v2331_v9, %v1042_v7 }
 0x2d3   : > { %v1071_v13 = vsub.f32 2.0, %v1063_v10 }
 0x2d4   : > { %v2333_v12 = vpop.eup %2332 }
 0x2d5   : > { %v1064_v14 = vmul.f32 %v2333_v12, %v1044_v8  ;;  %v1079_v16 = vmul.f32 %v2331_v9, %v1071_v13 }
 0x2d7   : > { %v1072_v15 = vsub.f32 2.0, %v1064_v14 }
 0x2d9   : > { %v1080_v20 = vmul.f32 %v2333_v12, %v1072_v15 }
 0x2fb   : > { %v1207_v17 = vpop.f32.mrf.mxu0 }
 0x2fc   : > { %v1415_v18 = vmul.f32 %v1207_v17, %v1079_v16 }
 0x2fd   : > { %v2091_v19 = vpop.f32.mrf.mxu0 }
 0x2fe   : > { %1423 = vst [vmem:[#allocation2 + $0x18] sm:$0xff] %v1415_v18 }
 0x2ff   : > { %v1210_v21 = vpop.f32.mrf.mxu0  ;;  %v1247_v22 = vpop.f32.mrf.mxu1 }
 0x300   : > { %v1416_v23 = vmul.f32 %v1247_v22, %v1080_v20 }
 0x301   : > { %v2092_v24 = vpop.f32.mrf.mxu0  ;;  %v2111_v25 = vpop.f32.mrf.mxu1 }
 0x302   : > { %1424 = vst [vmem:[#allocation2 + $0x10] sm:$0xff] %v1416_v23  ;;  %v1046_v28 = vpop.xlane.xlu0 %1045 }
 0x303   : > { %v1250_v26 = vpop.f32.mrf.mxu1  ;;  %v1048_v31 = vpop.xlane.xlu1 %1047  ;;  %2334 = vrcp.f32 %v1046_v28 }
 0x304   : > { %2336 = vrcp.f32 %v1048_v31 }
 0x305   : > { %v2112_v27 = vpop.f32.mrf.mxu1 }
 0x310   : > { %v2335_v32 = vpop.eup %2334 }
 0x311   : > { %v2337_v33 = vpop.eup %2336  ;;  %v1065_v34 = vmul.f32 %v2335_v32, %v1046_v28 }
 0x312   : > { %v1066_v35 = vmul.f32 %v2337_v33, %v1048_v31 }
 0x313   : > { %v1073_v36 = vsub.f32 2.0, %v1065_v34 }
 0x314   : > { %v1074_v41 = vsub.f32 2.0, %v1066_v35 }
 0x315   : > { %v1081_v42 = vmul.f32 %v2335_v32, %v1073_v36 }
 0x316   : > { %v1082_v44 = vmul.f32 %v2337_v33, %v1074_v41 }
 0x33b   : > { %v1287_v43 = vpop.f32.mrf.mxu0 }
 0x33c   : > { %v1417_v45 = vmul.f32 %v1287_v43, %v1081_v42  ;;  %v1327_v48 = vpop.f32.mrf.mxu1 }
 0x33d   : > { %v1418_v49 = vmul.f32 %v1327_v48, %v1082_v44  ;;  %v2131_v50 = vpop.f32.mrf.mxu0 }
 0x33e   : > { %1425 = vst [vmem:[#allocation2 + $0x8] sm:$0xff] %v1417_v45  ;;  %v2151_v51 = vpop.f32.mrf.mxu1 }
 0x33f   : > { %1426 = vst [vmem:[#allocation2 + $0x20] sm:$0xff] %v1418_v49  ;;  %v1290_v52 = vpop.f32.mrf.mxu0 }
 0x340   : > { %v1330_v53 = vpop.f32.mrf.mxu1 }
 0x341   : > { %v2132_v54 = vpop.f32.mrf.mxu0 }
 0x342   : > { %v2152_v56 = vpop.f32.mrf.mxu1  ;;  %v1050_v57 = vpop.xlane.xlu0 %1049 }
 0x343   : > { %v1052_v39 = vpop.xlane.xlu1 %1051  ;;  %2338 = vrcp.f32 %v1050_v57 }
 0x344   : > { %2340 = vrcp.f32 %v1052_v39 }
 0x350   : > { %v2339_v58 = vpop.eup %2338 }
 0x351   : > { %v2341_v59 = vpop.eup %2340  ;;  %v1067_v11 = vmul.f32 %v2339_v58, %v1050_v57 }
 0x352   : > { %v1068_v55 = vmul.f32 %v2341_v59, %v1052_v39 }
 0x353   : > { %v1075_v60 = vsub.f32 2.0, %v1067_v11 }
 0x354   : > { %v1076_v61 = vsub.f32 2.0, %v1068_v55 }
 0x355   : > { %v1083_v40 = vmul.f32 %v2339_v58, %v1075_v60 }
 0x356   : > { %v1084_v47 = vmul.f32 %v2341_v59, %v1076_v61 }
 0x37b   : > { %v1367_v46 = vpop.f32.mrf.mxu0 }
 0x37c   : > { %v1419_v62 = vmul.f32 %v1367_v46, %v1083_v40  ;;  %v1407_v63 = vpop.f32.mrf.mxu1 }
 0x37d   : > { %v1420_v37 = vmul.f32 %v1407_v63, %v1084_v47  ;;  %v2171_v29 = vpop.f32.mrf.mxu0 }
 0x37e   : > { %1427 = vst [vmem:[#allocation2 + $0x28] sm:$0xff] %v1419_v62  ;;  %v2191_v38 = vpop.f32.mrf.mxu1  ;;  %1432 = sbr.rel (%p1720_p7) target bundleno = 904 (0x388), region = 44 }
 0x37f   : > { %1428 = vst [vmem:[#allocation2 + $0x38] sm:$0xff] %v1420_v37  ;;  %v1370_v0 = vpop.f32.mrf.mxu0 }
 0x380   : > { %v1410_v1 = vpop.f32.mrf.mxu1 }
 0x381   : > { %v2172_v2 = vpop.f32.mrf.mxu0 }
 0x382   : > { %v2192_v30 = vpop.f32.mrf.mxu1 }
 0x383   : > { %v1433_v3 = vld [vmem:[#allocation2 + $0x30] sm:$0xff]  ;;  %v1434_v4 = vld [vmem:[#allocation2] sm:$0xff]  ;;  %v1435_v5 = vld [vmem:[#allocation2 + $0x18] sm:$0xff] }
 0x384   : > { %1441 = vst [vmem:[%s2705_s24] sm:$0xff] %v1433_v3  ;;  %1442 = vst [vmem:[%s2705_s24 + $0x8] sm:$0xff] %v1434_v4  ;;  %v1436_v6 = vld [vmem:[#allocation2 + $0x10] sm:$0xff]  ;;  %v1437_v7 = vld [vmem:[#allocation2 + $0x8] sm:$0xff] }
 0x385   : > { %1443 = vst [vmem:[%s2705_s24 + $0x10] sm:$0xff] %v1435_v5  ;;  %v1438_v8 = vld [vmem:[#allocation2 + $0x20] sm:$0xff]  ;;  %1444 = vst [vmem:[%s2705_s24 + $0x18] sm:$0xff] %v1436_v6  ;;  %v1439_v9 = vld [vmem:[#allocation2 + $0x28] sm:$0xff] }
 0x386   : > { %1445 = vst [vmem:[%s2705_s24 + $0x20] sm:$0xff] %v1437_v7  ;;  %1446 = vst [vmem:[%s2705_s24 + $0x28] sm:$0xff] %v1438_v8  ;;  %v1440_v10 = vld [vmem:[#allocation2 + $0x38] sm:$0xff] }
 0x387   : > { %1447 = vst [vmem:[%s2705_s24 + $0x30] sm:$0xff] %v1439_v9  ;;  %1448 = vst [vmem:[%s2705_s24 + $0x38] sm:$0xff] %v1440_v10 }
 0x388 PF: > { %s1728_s15 = sshll.u32 %s2480_s16, 10  ;;  %s1463_s22 = sshll.u32 %s2705_s24, 4  ;;  %s3182_s22 = int_to_ptr.vmem [resolvable:$true] %s1463_s22 }
 0x389   : > { %s3179_s6 = scalar_lea.hbm %s3246_s2, %s1728_s15  ;;  %s1450_s20 = scalar_lea.sflag [#allocation5], %s2690_s30 }
 0x38a   : > { %s2368_s9 = scalar_lea.vmem %s3182_s22, 1024  ;;  %s2504_s25 = smov [#allocation8]  }
 0x38b   : > { %p2369_p13 = scmp.ne.s32.totalorder %s3182_s22, %s2368_s9  ;;  %s2372_s23 = sshll.u32 %s2504_s25, 4  ;;  %s2373_s23 = int_to_ptr.vmem [resolvable:$false] %s2372_s23 }
 0x38c   : > { %s2374_s16 = scalar_lea.vmem %s2373_s23, 2048  ;;  %p2375_p11 = scmp.lt.s32.totalorder %s3182_s22, %s2373_s23 }
 0x38d   : > { %p2370_p6 = pnand %p2369_p13, %p2644_p4  ;;  %p2376_p0 = scmp.lt.s32.totalorder %s2374_s16, %s2368_s9 }
 0x38f   : > { %p2371_p9 = pneg %p2370_p6  ;;  %p2377_p5 = por %p2376_p0, %p2375_p11 }
 0x391   : > { %p2378_p2 = pnand %p2377_p5, %p2371_p9 }
 0x393   : > { %2381 = shalt.err (!%p2378_p2)
}
 0x394   : > { %s2382_s3 = scalar_lea.hbm %s3179_s6, 1024  ;;  %s2386_s4 = scalar_lea.hbm %s3246_s2, 2048 }
 0x395   : > { %p2383_p3 = scmp.ne.s32.totalorder %s3179_s6, %s2382_s3  ;;  %p2387_p12 = scmp.lt.s32.totalorder %s3179_s6, %s3246_s2 }
 0x396   : > { %p2388_p7 = scmp.lt.s32.totalorder %s2386_s4, %s2382_s3 }
 0x397   : > { %p2384_p10 = pnand %p2383_p3, %p2644_p4 }
 0x398   : > { %p2389_p13 = por %p2388_p7, %p2387_p12 }
 0x399   : > { %p2385_p1 = pneg %p2384_p10 }
 0x39b   : > { %p2390_p6 = pnand %p2389_p13, %p2385_p1 }
 0x39d   : > { %2393 = shalt.err (!%p2390_p6)
}
 0x39e   : > { %s2505_s26 = smov 128   ;;  %s2506_s24 = smov 8  }
 0x39f   : > { %2204 = dma.vmem_to_hbm [thread:$0]  (%p2644_p4), %s3182_s22, 1024, %s3179_s6, %s1450_s20, %s2505_s26, %s2505_s26, %s2506_s24  }
 0x3a0 PF: > { %p2210_p9 = scmp.ge.s32.totalorder %s2492_s19, 2  ;;  %s1478_s29 = sand.u32 1, %s2464_s12  }
 0x3a1   : > { %s1479_s7 = scalar_lea.sflag [#allocation5], %s1478_s29 }
 0x3a2   : > { %p2207_p11 = pnand %p2210_p9, %p2651_p8 }
 0x3a4   : > { %p2208_p0 = pneg %p2207_p11 }
 0x3a6   : > { %2447 = dma.done.wait (%p2208_p0), %s1479_s7, 1024  }
 0x3a7   : > { %2449 = vsyncadd (%p2208_p0), %s1479_s7, 4294966272  ;;  %s21_s19 = sadd.s32 1, %s2492_s19   ;;  %s3265_s8 = sld [smem:[#allocation18_spill]] }
 0x3a8   : > { %p18_p5 = scmp.ge.s32.totalorder %s21_s19, 10   ;;  %s3266_s30 = sld [smem:[#allocation17_spill]] }
 0x3a9   : > { %s3267_s6 = sld [smem:[#allocation15_spill]]  ;;  %s3269_s9 = smov %s2456_s10 }
 0x3aa   : > { %s3268_s22 = sld [smem:[#allocation16_spill]]  ;;  %s3270_s10 = smov %s2460_s11 }
 0x3ab   : > { %s3272_s12 = smov %s2468_s13  ;;  %s3273_s13 = smov %s2472_s14 }
 0x3ac   : > { %s3275_s15 = smov %s2484_s17  ;;  %s3276_s16 = smov %s2488_s18 }
 0x3ad   : > { %s3271_s11 = smov %s3265_s8  ;;  %20 = sbr.rel (!%p18_p5) target bundleno = 11 (0xb), region = 100 }
 0x3ae   : > { %s3274_s14 = smov %s3266_s30 }
 0x3af   : > { %s3277_s17 = smov %s3267_s6 }
 0x3b0   : > { %s3278_s18 = smov %s3268_s22 }
 0x3b2   :  { %1484 = vsyncpa [#allocation4], 1 }
 0x3b3   :  { %1486 = vsyncpa [#allocation4 + $0x1], 1 }
 0x3b4   :  { %1487 = vsyncpa [#allocation7], 1 }
 0x3b5   :  { %1489 = vsyncpa [#allocation7 + $0x1], 1 }
 0x3b6   :  { %1490 = vsyncpa [#allocation5], 1 }
 0x3b7   :  { %1492 = vsyncpa [#allocation5 + $0x1], 1 }

</bundles_post_ra>
